<compile_context>
chip_gen: v6e
topology: v6e:2x2x1
jax: 0.10.0
libtpu: 0.0.40
codegen_flags: <defaults>
</compile_context>

<pallas_src>
import functools

import jax
import jax.numpy as jnp
from jax import lax
from jax.experimental import pallas as pl
from jax.experimental.pallas import tpu as pltpu

# ---------------- Gemma2 config (small, synthetic) ----------------
B = 2                 # batch
T = 8                 # input_len (prefill length)
H = 32                # hidden_size
NH = 4                # num_attention_heads
KV = 2                # num_key_value_heads
GROUP = NH // KV      # queries per kv head
DH = 16               # head_dim
I = 64                # intermediate_size
MAX = 16              # kv-cache max_seq_len
EPS = 1e-6            # rms_norm_eps
SOFTCAP = 50.0        # attn_logit_softcapping
SCALE = DH ** -0.5    # query_pre_attn_scalar == head_dim  (0.25, exact pow2)
ROPE_THETA = 10000.0
SLIDING_WINDOW = 4
QS = NH * DH          # 64
KS = KV * DH          # 32
QKS = QS + KS         # 96  (rotary q|k slab width)
PROJ = 256            # fused projection width, padded to 2x128 lanes
MASK_MIN = -2.3819763e38

_HP = jax.lax.Precision.HIGHEST   # reference-side precision only


# ---------------- shared math helpers (used by kernel and reference) ----------------
def _rmsnorm(x, w):
    var = jnp.mean(x * x, axis=-1, keepdims=True)
    return x * lax.rsqrt(var + EPS) * (1.0 + w)


def _gelu_tanh(x):
    c = 0.7978845608028654  # sqrt(2/pi)
    return 0.5 * x * (1.0 + jnp.tanh(c * (x + 0.044715 * x * x * x)))


# ---------------- Pallas kernel: the whole Gemma2Block in one invocation ----------------
def gemma2_block_kernel(x_ref, idx_ref, mask_ref, kin_ref, vin_ref,
                        cos_ref, sin_ref,
                        ln_in_ref, wqkv_ref, o_w_ref, ln_post_ref,
                        ln_preffw_ref, gateup_w_ref, down_w_ref, ln_postffw_ref,
                        out_ref, kout_ref, vout_ref):
    x = x_ref[...]                                   # (B*T, H) batch sublane-stacked

    # ---- input_layernorm + fused qkv|rotate-half projection (one 256-lane matmul) ----
    h = _rmsnorm(x, ln_in_ref[...])
    proj = jnp.dot(h, wqkv_ref[...], preferred_element_type=jnp.float32)   # (B*T, 256)
    # cols [0:96)    raw q|k (q columns pre-scaled by SCALE host-side)
    # cols [96:128)  v
    # cols [128:224) rotate-half(q|k) (sign-flipped halves, folded into the weight)
    qk = (proj[:, :QKS] * cos_ref[...]
          + proj[:, QS + 2 * KS:QS + 2 * KS + QKS] * sin_ref[...])        # RoPE
    q_all = qk[:, :QS]                               # (B*T, QS), already * SCALE
    k_all = qk[:, QS:]                               # (B*T, KS)
    v_all = proj[:, QKS:QS + 2 * KS]                 # (B*T, KS)

    # ---- KV-cache scatter: one-hot MXU matmul + single select (idx shared across batch).
    #      Matches torch index_copy_ for unique in-range kv_write_indices. ----
    slot_ids = lax.broadcasted_iota(jnp.int32, (MAX, T), 0)               # (MAX, T)
    onehot = (slot_ids == idx_ref[...]).astype(jnp.float32)               # (MAX, T)
    written = jnp.max(onehot, axis=1, keepdims=True) > 0.5                # (MAX, 1)
    # TODO(synk): at production MAX, keep the cache in HBM (memory_space=pl.ANY),
    # DMA-scatter only the T updated rows, and tile attention over MAX with an
    # online-softmax accumulator (skipping out-of-window tiles for local_sliding).

    attn_rows = []
    for b in range(B):
        rows = slice(b * T, (b + 1) * T)
        k_full = jnp.where(written,
                           jnp.dot(onehot, k_all[rows, :],
                                   preferred_element_type=jnp.float32),
                           kin_ref[b])                                    # (MAX, KS)
        v_full = jnp.where(written,
                           jnp.dot(onehot, v_all[rows, :],
                                   preferred_element_type=jnp.float32),
                           vin_ref[b])
        kout_ref[b] = k_full                       # in-place (aliased) cache writeback
        vout_ref[b] = v_full

        mask_b = mask_ref[b]                                              # (T, MAX)
        acc = jnp.zeros((T, H), jnp.float32)
        for kvh in range(KV):
            k_head = k_full[:, kvh * DH:(kvh + 1) * DH]                   # (MAX, DH)
            v_head = v_full[:, kvh * DH:(kvh + 1) * DH]
            for g in range(GROUP):
                hh = kvh * GROUP + g
                q_h = q_all[rows, hh * DH:(hh + 1) * DH]                  # (T, DH)
                s = lax.dot_general(q_h, k_head, (((1,), (1,)), ((), ())),
                                    preferred_element_type=jnp.float32)   # (T, MAX)
                s = jnp.tanh(s * (1.0 / SOFTCAP)) * SOFTCAP + mask_b
                # Softcap bounds |logit| <= 50, so exp() is finite in f32 without a
                # row-max subtraction; masked entries (MASK_MIN) underflow to 0.
                p = jnp.exp(s)
                p = p / jnp.sum(p, axis=-1, keepdims=True)   # exact divide (correctness)
                o = jnp.dot(p, v_head, preferred_element_type=jnp.float32)  # (T, DH)
                # Accumulate o_proj per head: no attn scratch, no sub-128-lane stores.
                acc = acc + jnp.dot(o, o_w_ref[hh * DH:(hh + 1) * DH, :],
                                    preferred_element_type=jnp.float32)
        attn_rows.append(acc)
    attn = jnp.concatenate(attn_rows, axis=0)                             # (B*T, H)

    # ---- post-attn norm + residual ----
    h2 = x + _rmsnorm(attn, ln_post_ref[...])

    # ---- pre-ffw norm, fused GeGLU MLP (single (H,2I) matmul), post-ffw norm + residual ----
    h3 = _rmsnorm(h2, ln_preffw_ref[...])
    gu = jnp.dot(h3, gateup_w_ref[...], preferred_element_type=jnp.float32)  # (B*T, 2I)
    mlp = jnp.dot(_gelu_tanh(gu[:, :I]) * gu[:, I:], down_w_ref[...],
                  preferred_element_type=jnp.float32)                        # (B*T, H)
    out_ref[...] = h2 + _rmsnorm(mlp, ln_postffw_ref[...])


# ---------------- wrapper ----------------
@functools.partial(jax.jit, static_argnames=("attn_type",))
def gemma2_block(params, hidden_states, cos, sin, kv_write_indices,
                 kv_cache, mask, local_mask, attn_type="global"):
    k_cache, v_cache = kv_cache
    # Gemma2 picks the local sliding-window mask for LOCAL_SLIDING layers.
    use_mask = local_mask if attn_type == "local_sliding" else mask

    # Batch sublane-stacked activations; cache kept in the PyTorch layout with
    # only a FREE reshape to the lane-denser (B, MAX, KV*DH) view.
    x2d = hidden_states.reshape(B * T, H)
    k_flat = k_cache.reshape(B, MAX, KS)
    v_flat = v_cache.reshape(B, MAX, KS)
    idx2d = kv_write_indices.astype(jnp.int32).reshape(1, T)

    # Position-dependent RoPE tables for the full q|k slab, batch-stacked.
    cos_head = jnp.concatenate([cos, cos], axis=-1)                 # (T, DH)
    sin_head = jnp.concatenate([sin, sin], axis=-1)
    cos_ext = jnp.tile(cos_head, (B, NH + KV))                      # (B*T, 96)
    sin_ext = jnp.tile(sin_head, (B, NH + KV))

    # Fold the query pre-attn SCALE and the rotate-half permutation into the
    # QKV weight via exact column shuffles / sign flips (no matmul), then pad
    # the fused projection to 256 output lanes.
    wqkv = params["qkv_w_t"]                                        # (H, QS+2*KS)
    wqkv_scaled = jnp.concatenate([wqkv[:, :QS] * SCALE, wqkv[:, QS:]], axis=-1)
    wqk = wqkv_scaled[:, :QKS].reshape(H, NH + KV, 2, DH // 2)
    wqk_half = jnp.concatenate([-wqk[:, :, 1, :], wqk[:, :, 0, :]],
                               axis=2).reshape(H, QKS)              # [-W2 | W1] per head
    pad = jnp.zeros((H, PROJ - (QS + 2 * KS) - QKS), jnp.float32)   # (H, 32)
    wqkv_big = jnp.concatenate([wqkv_scaled, wqk_half, pad], axis=-1)  # (H, 256)

    # Fused gate|up weight -> one 128-lane matmul in the kernel.
    gateup_w = jnp.concatenate([params["gate_w_t"], params["up_w_t"]], axis=-1)

    weights = (params["ln_in"], wqkv_big, params["o_w_t"], params["ln_post"],
               params["ln_preffw"], gateup_w, params["down_w_t"],
               params["ln_postffw"])

    def full_spec(arr):
        nd = arr.ndim
        return pl.BlockSpec(arr.shape, lambda i, _nd=nd: (0,) * _nd)

    # TODO(synk): at production H/I/MAX, tile the weight matmuls over a reduction
    # grid axis (bf16 weights, f32 VMEM accumulator) and make the out_specs
    # lane-dense; at this tiny config everything fits VMEM in a single step.
    # TODO(synk): on v7x (2 TensorCores) shard the batch with pl.core_map /
    # pltpu.CORE_PARALLEL once B is large enough; v5e/v6e are single-TC so a
    # single grid step (no per-batch pipeline overhead) is optimal here.
    grid_spec = pltpu.PrefetchScalarGridSpec(
        num_scalar_prefetch=0,
        grid=(1,),
        in_specs=[
            pl.BlockSpec((B * T, H), lambda i: (0, 0)),          # hidden (batch stacked)
            pl.BlockSpec((1, T), lambda i: (0, 0)),              # kv_write_indices
            pl.BlockSpec((B, T, MAX), lambda i: (0, 0, 0)),      # additive mask
            pl.BlockSpec((B, MAX, KS), lambda i: (0, 0, 0)),     # k cache (aliased)
            pl.BlockSpec((B, MAX, KS), lambda i: (0, 0, 0)),     # v cache (aliased)
            pl.BlockSpec((B * T, QKS), lambda i: (0, 0)),        # cos (full q|k width)
            pl.BlockSpec((B * T, QKS), lambda i: (0, 0)),        # sin (full q|k width)
        ] + [full_spec(w) for w in weights],
        out_specs=[
            pl.BlockSpec((B * T, H), lambda i: (0, 0)),
            pl.BlockSpec((B, MAX, KS), lambda i: (0, 0, 0)),
            pl.BlockSpec((B, MAX, KS), lambda i: (0, 0, 0)),
        ],
    )

    out2d, k_out, v_out = pl.pallas_call(
        gemma2_block_kernel,
        grid_spec=grid_spec,
        out_shape=(
            jax.ShapeDtypeStruct((B * T, H), jnp.float32),
            jax.ShapeDtypeStruct((B, MAX, KS), jnp.float32),
            jax.ShapeDtypeStruct((B, MAX, KS), jnp.float32),
        ),
        # In-place KV-cache update: k_flat -> k_out, v_flat -> v_out.
        input_output_aliases={3: 1, 4: 2},
        compiler_params=pltpu.CompilerParams(
            dimension_semantics=("arbitrary",)),
    )(x2d, idx2d, use_mask, k_flat, v_flat, cos_ext, sin_ext, *weights)

    return (out2d.reshape(B, T, H),
            (k_out.reshape(B, MAX, KV, DH), v_out.reshape(B, MAX, KV, DH)))


# ---------------- deterministic parameter init (synthetic weights) ----------------
def init_params(key):
    keys = jax.random.split(key, 9)
    s = 0.05
    return {
        # Linear weights are stored pre-transposed (in_features, out_features)
        # so the kernel computes y = x @ W_t (== x @ W.T in PyTorch).
        "ln_in":      0.1 * jax.random.normal(keys[0], (1, H), jnp.float32),
        "qkv_w_t":    s * jax.random.normal(keys[1], (H, QS + 2 * KS), jnp.float32),
        "o_w_t":      s * jax.random.normal(keys[2], (QS, H), jnp.float32),
        "ln_post":    0.1 * jax.random.normal(keys[3], (1, H), jnp.float32),
        "ln_preffw":  0.1 * jax.random.normal(keys[4], (1, H), jnp.float32),
        "gate_w_t":   s * jax.random.normal(keys[5], (H, I), jnp.float32),
        "up_w_t":     s * jax.random.normal(keys[6], (H, I), jnp.float32),
        "down_w_t":   s * jax.random.normal(keys[7], (I, H), jnp.float32),
        "ln_postffw": 0.1 * jax.random.normal(keys[8], (1, H), jnp.float32),
    }
    # TODO(synk): quantized (int8) weight path of GemmaMLP/GemmaAttention not modeled (quant=False).


# ---------------- pure-JAX reference of the PyTorch forward (HIGHEST precision) ----------------
def ref_gemma2_block(params, x, cos, sin, idx, kv_cache, mask):
    dot = functools.partial(jnp.dot, precision=_HP)

    def rope(t):  # (B, T, nh, DH)
        half = DH // 2
        t1, t2 = t[..., :half], t[..., half:]
        c = cos[None, :, None, :]
        s = sin[None, :, None, :]
        return jnp.concatenate([t1 * c - t2 * s, t1 * s + t2 * c], axis=-1)

    h = _rmsnorm(x, params["ln_in"])
    qkv = dot(h, params["qkv_w_t"])
    q = qkv[..., :QS].reshape(B, T, NH, DH)
    k = qkv[..., QS:QS + KS].reshape(B, T, KV, DH)
    v = qkv[..., QS + KS:].reshape(B, T, KV, DH)
    q, k = rope(q), rope(k)
    k_cache, v_cache = kv_cache
    kc = k_cache.at[:, idx].set(k)
    vc = v_cache.at[:, idx].set(v)
    key = jnp.repeat(kc, GROUP, axis=2)
    val = jnp.repeat(vc, GROUP, axis=2)
    qt = jnp.transpose(q, (0, 2, 1, 3)) * SCALE
    kt = jnp.transpose(key, (0, 2, 1, 3))
    vt = jnp.transpose(val, (0, 2, 1, 3))
    scores = jnp.einsum("bhtd,bhsd->bhts", qt, kt, precision=_HP)
    scores = jnp.tanh(scores / SOFTCAP) * SOFTCAP
    scores = scores + mask[:, None, :, :]
    probs = jax.nn.softmax(scores, axis=-1)
    attn = jnp.einsum("bhts,bhsd->bhtd", probs, vt, precision=_HP)
    attn = jnp.transpose(attn, (0, 2, 1, 3)).reshape(B, T, NH * DH)
    attn = dot(attn, params["o_w_t"])
    h2 = x + _rmsnorm(attn, params["ln_post"])
    h3 = _rmsnorm(h2, params["ln_preffw"])
    gate = _gelu_tanh(dot(h3, params["gate_w_t"]))
    up = dot(h3, params["up_w_t"])
    mlp = dot(gate * up, params["down_w_t"])
    return h2 + _rmsnorm(mlp, params["ln_postffw"]), kc, vc


if __name__ == "__main__":
    key = jax.random.PRNGKey(0)
    kp, kx, kk, kvk = jax.random.split(key, 4)
    params = init_params(kp)

    x = jax.random.normal(kx, (B, T, H), jnp.float32)
    k_cache = 0.5 * jax.random.normal(kk, (B, MAX, KV, DH), jnp.float32)
    v_cache = 0.5 * jax.random.normal(kvk, (B, MAX, KV, DH), jnp.float32)
    kv_write_indices = jnp.arange(T, dtype=jnp.int32)

    # freqs_cis (complex in PyTorch) passed as cos/sin tables for positions 0..T-1.
    inv_freq = 1.0 / (ROPE_THETA ** (jnp.arange(0, DH, 2, dtype=jnp.float32) / DH))
    ang = jnp.arange(T, dtype=jnp.float32)[:, None] * inv_freq[None, :]   # (T, DH//2)
    cos, sin = jnp.cos(ang), jnp.sin(ang)

    # additive masks (B, T, MAX): causal global mask + sliding-window local mask.
    q_pos = jnp.arange(T)[:, None]
    k_pos = jnp.arange(MAX)[None, :]
    causal = k_pos <= q_pos
    mask = jnp.broadcast_to(jnp.where(causal, 0.0, MASK_MIN).astype(jnp.float32),
                            (B, T, MAX))
    local_mask = jnp.broadcast_to(
        jnp.where(causal & (q_pos - k_pos < SLIDING_WINDOW), 0.0, MASK_MIN)
        .astype(jnp.float32), (B, T, MAX))

    # Reference first (exact-f32 matmul precision; XLA:TPU's DEFAULT precision
    # demotes f32 matmuls to a single bf16 MXU pass, which was the bulk of the
    # previous kernel-vs-reference mismatch).
    ref_out, ref_k, ref_v = ref_gemma2_block(params, x, cos, sin, kv_write_indices,
                                             (k_cache, v_cache), mask)
    jax.block_until_ready((ref_out, ref_k, ref_v))

    out, (k_new, v_new) = gemma2_block(params, x, cos, sin, kv_write_indices,
                                       (k_cache, v_cache), mask, local_mask,
                                       attn_type="global")
    jax.block_until_ready((out, k_new, v_new))

    # Tolerance leaves headroom for the MXU's f32 pass precision inside the kernel.
    assert jnp.allclose(out, ref_out, rtol=1e-2, atol=1e-2), \
        float(jnp.max(jnp.abs(out - ref_out)))
    assert jnp.allclose(k_new, ref_k, rtol=1e-2, atol=1e-2), \
        float(jnp.max(jnp.abs(k_new - ref_k)))
    assert jnp.allclose(v_new, ref_v, rtol=1e-2, atol=1e-2), \
        float(jnp.max(jnp.abs(v_new - ref_v)))
    print("KERNEL_OK")
</pallas_src>

<mosaic_0001>
module attributes {stable_mosaic.version = 11 : i64} {
  func.func @gemma2_block_kernel(%arg0: i32, %arg1: memref<16x32xf32, #tpu.memory_space<vmem>>, %arg2: memref<1x8xi32, #tpu.memory_space<vmem>>, %arg3: memref<2x8x16xf32, #tpu.memory_space<vmem>>, %arg4: memref<2x16x32xf32, #tpu.memory_space<vmem>>, %arg5: memref<2x16x32xf32, #tpu.memory_space<vmem>>, %arg6: memref<16x96xf32, #tpu.memory_space<vmem>>, %arg7: memref<16x96xf32, #tpu.memory_space<vmem>>, %arg8: memref<1x32xf32, #tpu.memory_space<vmem>>, %arg9: memref<32x256xf32, #tpu.memory_space<vmem>>, %arg10: memref<64x32xf32, #tpu.memory_space<vmem>>, %arg11: memref<1x32xf32, #tpu.memory_space<vmem>>, %arg12: memref<1x32xf32, #tpu.memory_space<vmem>>, %arg13: memref<32x128xf32, #tpu.memory_space<vmem>>, %arg14: memref<64x32xf32, #tpu.memory_space<vmem>>, %arg15: memref<1x32xf32, #tpu.memory_space<vmem>>, %arg16: memref<16x32xf32, #tpu.memory_space<vmem>>, %arg17: memref<2x16x32xf32, #tpu.memory_space<vmem>>, %arg18: memref<2x16x32xf32, #tpu.memory_space<vmem>>) attributes {dimension_semantics = [#tpu.dimension_semantics<arbitrary>], iteration_bounds = array<i64: 1>, scalar_prefetch = 0 : i64, scratch_operands = 0 : i64, tpu.core_type = #tpu.core_type<tc>, window_params = [{pipeline_mode = #tpu.pipeline_mode<synchronous>, transform_indices = @transform_0, window_bounds = array<i64: 16, 32>}, {pipeline_mode = #tpu.pipeline_mode<synchronous>, transform_indices = @transform_1, window_bounds = array<i64: 1, 8>}, {pipeline_mode = #tpu.pipeline_mode<synchronous>, transform_indices = @transform_2, window_bounds = array<i64: 2, 8, 16>}, {pipeline_mode = #tpu.pipeline_mode<synchronous>, transform_indices = @transform_3, window_bounds = array<i64: 2, 16, 32>}, {pipeline_mode = #tpu.pipeline_mode<synchronous>, transform_indices = @transform_4, window_bounds = array<i64: 2, 16, 32>}, {pipeline_mode = #tpu.pipeline_mode<synchronous>, transform_indices = @transform_5, window_bounds = array<i64: 16, 96>}, {pipeline_mode = #tpu.pipeline_mode<synchronous>, transform_indices = @transform_6, window_bounds = array<i64: 16, 96>}, {pipeline_mode = #tpu.pipeline_mode<synchronous>, transform_indices = @transform_7, window_bounds = array<i64: 1, 32>}, {pipeline_mode = #tpu.pipeline_mode<synchronous>, transform_indices = @transform_8, window_bounds = array<i64: 32, 256>}, {pipeline_mode = #tpu.pipeline_mode<synchronous>, transform_indices = @transform_9, window_bounds = array<i64: 64, 32>}, {pipeline_mode = #tpu.pipeline_mode<synchronous>, transform_indices = @transform_10, window_bounds = array<i64: 1, 32>}, {pipeline_mode = #tpu.pipeline_mode<synchronous>, transform_indices = @transform_11, window_bounds = array<i64: 1, 32>}, {pipeline_mode = #tpu.pipeline_mode<synchronous>, transform_indices = @transform_12, window_bounds = array<i64: 32, 128>}, {pipeline_mode = #tpu.pipeline_mode<synchronous>, transform_indices = @transform_13, window_bounds = array<i64: 64, 32>}, {pipeline_mode = #tpu.pipeline_mode<synchronous>, transform_indices = @transform_14, window_bounds = array<i64: 1, 32>}, {pipeline_mode = #tpu.pipeline_mode<synchronous>, transform_indices = @transform_15, window_bounds = array<i64: 16, 32>}, {pipeline_mode = #tpu.pipeline_mode<synchronous>, transform_indices = @transform_16, window_bounds = array<i64: 2, 16, 32>}, {pipeline_mode = #tpu.pipeline_mode<synchronous>, transform_indices = @transform_17, window_bounds = array<i64: 2, 16, 32>}]} {
    %c0 = arith.constant 0 : index
    %c0_0 = arith.constant 0 : index
    %0 = vector.load %arg1[%c0, %c0_0] : memref<16x32xf32, #tpu.memory_space<vmem>>, vector<16x32xf32>
    %c0_1 = arith.constant 0 : index
    %c0_2 = arith.constant 0 : index
    %1 = vector.load %arg8[%c0_1, %c0_2] : memref<1x32xf32, #tpu.memory_space<vmem>>, vector<1x32xf32>
    %2 = arith.mulf %0, %0 : vector<16x32xf32>
    %cst = arith.constant dense<0.000000e+00> : vector<16xf32>
    %3 = vector.multi_reduction <add>, %2, %cst [1] : vector<16x32xf32> to vector<16xf32>
    %4 = vector.shape_cast %3 : vector<16xf32> to vector<16x1xf32>
    %cst_3 = arith.constant 3.200000e+01 : f32
    %5 = vector.broadcast %cst_3 : f32 to vector<16x1xf32>
    %6 = arith.divf %4, %5 : vector<16x1xf32>
    %cst_4 = arith.constant 9.99999997E-7 : f32
    %7 = vector.broadcast %cst_4 : f32 to vector<16x1xf32>
    %8 = arith.addf %6, %7 : vector<16x1xf32>
    %9 = math.rsqrt %8 : vector<16x1xf32>
    %10 = vector.broadcast %9 : vector<16x1xf32> to vector<16x32xf32>
    %11 = arith.mulf %0, %10 : vector<16x32xf32>
    %cst_5 = arith.constant 1.000000e+00 : f32
    %12 = vector.broadcast %cst_5 : f32 to vector<1x32xf32>
    %13 = arith.addf %12, %1 : vector<1x32xf32>
    %14 = vector.broadcast %13 : vector<1x32xf32> to vector<16x32xf32>
    %15 = arith.mulf %11, %14 : vector<16x32xf32>
    %c0_6 = arith.constant 0 : index
    %c0_7 = arith.constant 0 : index
    %16 = vector.load %arg9[%c0_6, %c0_7] : memref<32x256xf32, #tpu.memory_space<vmem>>, vector<32x256xf32>
    %cst_8 = arith.constant dense<0.000000e+00> : vector<16x256xf32>
    %17 = tpu.matmul %15, %16, %cst_8 {dimension_numbers = #tpu.dot_dimension_numbers<[1], [0], [0], [1], [0, 0, 1, 1], [], []>} : vector<16x32xf32>, vector<32x256xf32>, vector<16x256xf32> -> vector<16x256xf32>
    %18 = vector.extract_strided_slice %17 {offsets = [0, 0], sizes = [16, 96], strides = [1, 1]} : vector<16x256xf32> to vector<16x96xf32>
    %c0_9 = arith.constant 0 : index
    %c0_10 = arith.constant 0 : index
    %19 = vector.load %arg6[%c0_9, %c0_10] : memref<16x96xf32, #tpu.memory_space<vmem>>, vector<16x96xf32>
    %20 = arith.mulf %18, %19 : vector<16x96xf32>
    %21 = vector.extract_strided_slice %17 {offsets = [0, 128], sizes = [16, 96], strides = [1, 1]} : vector<16x256xf32> to vector<16x96xf32>
    %c0_11 = arith.constant 0 : index
    %c0_12 = arith.constant 0 : index
    %22 = vector.load %arg7[%c0_11, %c0_12] : memref<16x96xf32, #tpu.memory_space<vmem>>, vector<16x96xf32>
    %23 = arith.mulf %21, %22 : vector<16x96xf32>
    %24 = arith.addf %20, %23 : vector<16x96xf32>
    %25 = vector.extract_strided_slice %24 {offsets = [0, 0], sizes = [16, 64], strides = [1, 1]} : vector<16x96xf32> to vector<16x64xf32>
    %26 = vector.extract_strided_slice %24 {offsets = [0, 64], sizes = [16, 32], strides = [1, 1]} : vector<16x96xf32> to vector<16x32xf32>
    %27 = vector.extract_strided_slice %17 {offsets = [0, 96], sizes = [16, 32], strides = [1, 1]} : vector<16x256xf32> to vector<16x32xf32>
    %28 = tpu.iota {dimensions = array<i32: 0>} : vector<16x8xi32>
    %c0_13 = arith.constant 0 : index
    %c0_14 = arith.constant 0 : index
    %29 = vector.load %arg2[%c0_13, %c0_14] : memref<1x8xi32, #tpu.memory_space<vmem>>, vector<1x8xi32>
    %30 = vector.broadcast %29 : vector<1x8xi32> to vector<16x8xi32>
    %31 = arith.cmpi eq, %28, %30 : vector<16x8xi32>
    %32 = arith.extui %31 : vector<16x8xi1> to vector<16x8xi32>
    %33 = arith.sitofp %32 : vector<16x8xi32> to vector<16x8xf32>
    %cst_15 = arith.constant dense<0xFF800000> : vector<16xf32>
    %34 = vector.multi_reduction <maximumf>, %33, %cst_15 [1] : vector<16x8xf32> to vector<16xf32>
    %35 = vector.shape_cast %34 : vector<16xf32> to vector<16x1xf32>
    %cst_16 = arith.constant 5.000000e-01 : f32
    %36 = vector.broadcast %cst_16 : f32 to vector<16x1xf32>
    %37 = arith.cmpf ogt, %35, %36 : vector<16x1xf32>
    %38 = vector.extract_strided_slice %26 {offsets = [0, 0], sizes = [8, 32], strides = [1, 1]} : vector<16x32xf32> to vector<8x32xf32>
    %cst_17 = arith.constant dense<0.000000e+00> : vector<16x32xf32>
    %39 = tpu.matmul %33, %38, %cst_17 {dimension_numbers = #tpu.dot_dimension_numbers<[1], [0], [0], [1], [0, 0, 1, 1], [], []>} : vector<16x8xf32>, vector<8x32xf32>, vector<16x32xf32> -> vector<16x32xf32>
    %c0_18 = arith.constant 0 : index
    %c0_19 = arith.constant 0 : index
    %c0_20 = arith.constant 0 : index
    %40 = vector.load %arg4[%c0_18, %c0_19, %c0_20] : memref<2x16x32xf32, #tpu.memory_space<vmem>>, vector<1x16x32xf32>
    %41 = vector.shape_cast %40 : vector<1x16x32xf32> to vector<16x32xf32>
    %42 = vector.shape_cast %37 : vector<16x1xi1> to vector<16x1xi1>
    %43 = vector.broadcast %42 : vector<16x1xi1> to vector<16x32xi1>
    %44 = arith.select %43, %39, %41 : vector<16x32xi1>, vector<16x32xf32>
    %45 = vector.extract_strided_slice %27 {offsets = [0, 0], sizes = [8, 32], strides = [1, 1]} : vector<16x32xf32> to vector<8x32xf32>
    %cst_21 = arith.constant dense<0.000000e+00> : vector<16x32xf32>
    %46 = tpu.matmul %33, %45, %cst_21 {dimension_numbers = #tpu.dot_dimension_numbers<[1], [0], [0], [1], [0, 0, 1, 1], [], []>} : vector<16x8xf32>, vector<8x32xf32>, vector<16x32xf32> -> vector<16x32xf32>
    %c0_22 = arith.constant 0 : index
    %c0_23 = arith.constant 0 : index
    %c0_24 = arith.constant 0 : index
    %47 = vector.load %arg5[%c0_22, %c0_23, %c0_24] : memref<2x16x32xf32, #tpu.memory_space<vmem>>, vector<1x16x32xf32>
    %48 = vector.shape_cast %47 : vector<1x16x32xf32> to vector<16x32xf32>
    %49 = vector.shape_cast %37 : vector<16x1xi1> to vector<16x1xi1>
    %50 = vector.broadcast %49 : vector<16x1xi1> to vector<16x32xi1>
    %51 = arith.select %50, %46, %48 : vector<16x32xi1>, vector<16x32xf32>
    %c0_25 = arith.constant 0 : index
    %c0_26 = arith.constant 0 : index
    %c0_27 = arith.constant 0 : index
    %52 = vector.load %arg17[%c0_25, %c0_26, %c0_27] : memref<2x16x32xf32, #tpu.memory_space<vmem>>, vector<1x16x32xf32>
    %53 = vector.shape_cast %52 : vector<1x16x32xf32> to vector<16x32xf32>
    %54 = vector.shape_cast %44 : vector<16x32xf32> to vector<1x16x32xf32>
    tpu.vector_store %arg17[%c0_25, %c0_26, %c0_27], %54 {strides = array<i32>} : memref<2x16x32xf32, #tpu.memory_space<vmem>>, vector<1x16x32xf32>,
    %c0_28 = arith.constant 0 : index
    %c0_29 = arith.constant 0 : index
    %c0_30 = arith.constant 0 : index
    %55 = vector.load %arg18[%c0_28, %c0_29, %c0_30] : memref<2x16x32xf32, #tpu.memory_space<vmem>>, vector<1x16x32xf32>
    %56 = vector.shape_cast %55 : vector<1x16x32xf32> to vector<16x32xf32>
    %57 = vector.shape_cast %51 : vector<16x32xf32> to vector<1x16x32xf32>
    tpu.vector_store %arg18[%c0_28, %c0_29, %c0_30], %57 {strides = array<i32>} : memref<2x16x32xf32, #tpu.memory_space<vmem>>, vector<1x16x32xf32>,
    %c0_31 = arith.constant 0 : index
    %c0_32 = arith.constant 0 : index
    %c0_33 = arith.constant 0 : index
    %58 = vector.load %arg3[%c0_31, %c0_32, %c0_33] : memref<2x8x16xf32, #tpu.memory_space<vmem>>, vector<1x8x16xf32>
    %59 = vector.shape_cast %58 : vector<1x8x16xf32> to vector<8x16xf32>
    %cst_34 = arith.constant 0.000000e+00 : f32
    %60 = vector.broadcast %cst_34 : f32 to vector<8x32xf32>
    %61 = vector.extract_strided_slice %44 {offsets = [0, 0], sizes = [16, 16], strides = [1, 1]} : vector<16x32xf32> to vector<16x16xf32>
    %62 = vector.extract_strided_slice %51 {offsets = [0, 0], sizes = [16, 16], strides = [1, 1]} : vector<16x32xf32> to vector<16x16xf32>
    %63 = vector.extract_strided_slice %25 {offsets = [0, 0], sizes = [8, 16], strides = [1, 1]} : vector<16x64xf32> to vector<8x16xf32>
    %cst_35 = arith.constant dense<0.000000e+00> : vector<8x16xf32>
    %64 = tpu.matmul %63, %61, %cst_35 {dimension_numbers = #tpu.dot_dimension_numbers<[1], [1], [0], [0], [0, 0, 1, 0], [], []>} : vector<8x16xf32>, vector<16x16xf32>, vector<8x16xf32> -> vector<8x16xf32>
    %cst_36 = arith.constant 2.000000e-02 : f32
    %65 = vector.broadcast %cst_36 : f32 to vector<8x16xf32>
    %66 = arith.mulf %64, %65 : vector<8x16xf32>
    %67 = math.tanh %66 : vector<8x16xf32>
    %cst_37 = arith.constant 5.000000e+01 : f32
    %68 = vector.broadcast %cst_37 : f32 to vector<8x16xf32>
    %69 = arith.mulf %67, %68 : vector<8x16xf32>
    %70 = arith.addf %69, %59 : vector<8x16xf32>
    %71 = math.exp %70 : vector<8x16xf32>
    %cst_38 = arith.constant dense<0.000000e+00> : vector<8xf32>
    %72 = vector.multi_reduction <add>, %71, %cst_38 [1] : vector<8x16xf32> to vector<8xf32>
    %73 = vector.shape_cast %72 : vector<8xf32> to vector<8x1xf32>
    %74 = vector.broadcast %73 : vector<8x1xf32> to vector<8x16xf32>
    %75 = arith.divf %71, %74 : vector<8x16xf32>
    %cst_39 = arith.constant dense<0.000000e+00> : vector<8x16xf32>
    %76 = tpu.matmul %75, %62, %cst_39 {dimension_numbers = #tpu.dot_dimension_numbers<[1], [0], [0], [1], [0, 0, 1, 1], [], []>} : vector<8x16xf32>, vector<16x16xf32>, vector<8x16xf32> -> vector<8x16xf32>
    %c0_40 = arith.constant 0 : index
    %c0_41 = arith.constant 0 : index
    %77 = vector.load %arg10[%c0_40, %c0_41] : memref<64x32xf32, #tpu.memory_space<vmem>>, vector<16x32xf32>
    %cst_42 = arith.constant dense<0.000000e+00> : vector<8x32xf32>
    %78 = tpu.matmul %76, %77, %cst_42 {dimension_numbers = #tpu.dot_dimension_numbers<[1], [0], [0], [1], [0, 0, 1, 1], [], []>} : vector<8x16xf32>, vector<16x32xf32>, vector<8x32xf32> -> vector<8x32xf32>
    %79 = arith.addf %60, %78 : vector<8x32xf32>
    %80 = vector.extract_strided_slice %25 {offsets = [0, 16], sizes = [8, 16], strides = [1, 1]} : vector<16x64xf32> to vector<8x16xf32>
    %cst_43 = arith.constant dense<0.000000e+00> : vector<8x16xf32>
    %81 = tpu.matmul %80, %61, %cst_43 {dimension_numbers = #tpu.dot_dimension_numbers<[1], [1], [0], [0], [0, 0, 1, 0], [], []>} : vector<8x16xf32>, vector<16x16xf32>, vector<8x16xf32> -> vector<8x16xf32>
    %cst_44 = arith.constant 2.000000e-02 : f32
    %82 = vector.broadcast %cst_44 : f32 to vector<8x16xf32>
    %83 = arith.mulf %81, %82 : vector<8x16xf32>
    %84 = math.tanh %83 : vector<8x16xf32>
    %cst_45 = arith.constant 5.000000e+01 : f32
    %85 = vector.broadcast %cst_45 : f32 to vector<8x16xf32>
    %86 = arith.mulf %84, %85 : vector<8x16xf32>
    %87 = arith.addf %86, %59 : vector<8x16xf32>
    %88 = math.exp %87 : vector<8x16xf32>
    %cst_46 = arith.constant dense<0.000000e+00> : vector<8xf32>
    %89 = vector.multi_reduction <add>, %88, %cst_46 [1] : vector<8x16xf32> to vector<8xf32>
    %90 = vector.shape_cast %89 : vector<8xf32> to vector<8x1xf32>
    %91 = vector.broadcast %90 : vector<8x1xf32> to vector<8x16xf32>
    %92 = arith.divf %88, %91 : vector<8x16xf32>
    %cst_47 = arith.constant dense<0.000000e+00> : vector<8x16xf32>
    %93 = tpu.matmul %92, %62, %cst_47 {dimension_numbers = #tpu.dot_dimension_numbers<[1], [0], [0], [1], [0, 0, 1, 1], [], []>} : vector<8x16xf32>, vector<16x16xf32>, vector<8x16xf32> -> vector<8x16xf32>
    %c16 = arith.constant 16 : index
    %c0_48 = arith.constant 0 : index
    %94 = vector.load %arg10[%c16, %c0_48] : memref<64x32xf32, #tpu.memory_space<vmem>>, vector<16x32xf32>
    %cst_49 = arith.constant dense<0.000000e+00> : vector<8x32xf32>
    %95 = tpu.matmul %93, %94, %cst_49 {dimension_numbers = #tpu.dot_dimension_numbers<[1], [0], [0], [1], [0, 0, 1, 1], [], []>} : vector<8x16xf32>, vector<16x32xf32>, vector<8x32xf32> -> vector<8x32xf32>
    %96 = arith.addf %79, %95 : vector<8x32xf32>
    %97 = vector.extract_strided_slice %44 {offsets = [0, 16], sizes = [16, 16], strides = [1, 1]} : vector<16x32xf32> to vector<16x16xf32>
    %98 = vector.extract_strided_slice %51 {offsets = [0, 16], sizes = [16, 16], strides = [1, 1]} : vector<16x32xf32> to vector<16x16xf32>
    %99 = vector.extract_strided_slice %25 {offsets = [0, 32], sizes = [8, 16], strides = [1, 1]} : vector<16x64xf32> to vector<8x16xf32>
    %cst_50 = arith.constant dense<0.000000e+00> : vector<8x16xf32>
    %100 = tpu.matmul %99, %97, %cst_50 {dimension_numbers = #tpu.dot_dimension_numbers<[1], [1], [0], [0], [0, 0, 1, 0], [], []>} : vector<8x16xf32>, vector<16x16xf32>, vector<8x16xf32> -> vector<8x16xf32>
    %cst_51 = arith.constant 2.000000e-02 : f32
    %101 = vector.broadcast %cst_51 : f32 to vector<8x16xf32>
    %102 = arith.mulf %100, %101 : vector<8x16xf32>
    %103 = math.tanh %102 : vector<8x16xf32>
    %cst_52 = arith.constant 5.000000e+01 : f32
    %104 = vector.broadcast %cst_52 : f32 to vector<8x16xf32>
    %105 = arith.mulf %103, %104 : vector<8x16xf32>
    %106 = arith.addf %105, %59 : vector<8x16xf32>
    %107 = math.exp %106 : vector<8x16xf32>
    %cst_53 = arith.constant dense<0.000000e+00> : vector<8xf32>
    %108 = vector.multi_reduction <add>, %107, %cst_53 [1] : vector<8x16xf32> to vector<8xf32>
    %109 = vector.shape_cast %108 : vector<8xf32> to vector<8x1xf32>
    %110 = vector.broadcast %109 : vector<8x1xf32> to vector<8x16xf32>
    %111 = arith.divf %107, %110 : vector<8x16xf32>
    %cst_54 = arith.constant dense<0.000000e+00> : vector<8x16xf32>
    %112 = tpu.matmul %111, %98, %cst_54 {dimension_numbers = #tpu.dot_dimension_numbers<[1], [0], [0], [1], [0, 0, 1, 1], [], []>} : vector<8x16xf32>, vector<16x16xf32>, vector<8x16xf32> -> vector<8x16xf32>
    %c32 = arith.constant 32 : index
    %c0_55 = arith.constant 0 : index
    %113 = vector.load %arg10[%c32, %c0_55] : memref<64x32xf32, #tpu.memory_space<vmem>>, vector<16x32xf32>
    %cst_56 = arith.constant dense<0.000000e+00> : vector<8x32xf32>
    %114 = tpu.matmul %112, %113, %cst_56 {dimension_numbers = #tpu.dot_dimension_numbers<[1], [0], [0], [1], [0, 0, 1, 1], [], []>} : vector<8x16xf32>, vector<16x32xf32>, vector<8x32xf32> -> vector<8x32xf32>
    %115 = arith.addf %96, %114 : vector<8x32xf32>
    %116 = vector.extract_strided_slice %25 {offsets = [0, 48], sizes = [8, 16], strides = [1, 1]} : vector<16x64xf32> to vector<8x16xf32>
    %cst_57 = arith.constant dense<0.000000e+00> : vector<8x16xf32>
    %117 = tpu.matmul %116, %97, %cst_57 {dimension_numbers = #tpu.dot_dimension_numbers<[1], [1], [0], [0], [0, 0, 1, 0], [], []>} : vector<8x16xf32>, vector<16x16xf32>, vector<8x16xf32> -> vector<8x16xf32>
    %cst_58 = arith.constant 2.000000e-02 : f32
    %118 = vector.broadcast %cst_58 : f32 to vector<8x16xf32>
    %119 = arith.mulf %117, %118 : vector<8x16xf32>
    %120 = math.tanh %119 : vector<8x16xf32>
    %cst_59 = arith.constant 5.000000e+01 : f32
    %121 = vector.broadcast %cst_59 : f32 to vector<8x16xf32>
    %122 = arith.mulf %120, %121 : vector<8x16xf32>
    %123 = arith.addf %122, %59 : vector<8x16xf32>
    %124 = math.exp %123 : vector<8x16xf32>
    %cst_60 = arith.constant dense<0.000000e+00> : vector<8xf32>
    %125 = vector.multi_reduction <add>, %124, %cst_60 [1] : vector<8x16xf32> to vector<8xf32>
    %126 = vector.shape_cast %125 : vector<8xf32> to vector<8x1xf32>
    %127 = vector.broadcast %126 : vector<8x1xf32> to vector<8x16xf32>
    %128 = arith.divf %124, %127 : vector<8x16xf32>
    %cst_61 = arith.constant dense<0.000000e+00> : vector<8x16xf32>
    %129 = tpu.matmul %128, %98, %cst_61 {dimension_numbers = #tpu.dot_dimension_numbers<[1], [0], [0], [1], [0, 0, 1, 1], [], []>} : vector<8x16xf32>, vector<16x16xf32>, vector<8x16xf32> -> vector<8x16xf32>
    %c48 = arith.constant 48 : index
    %c0_62 = arith.constant 0 : index
    %130 = vector.load %arg10[%c48, %c0_62] : memref<64x32xf32, #tpu.memory_space<vmem>>, vector<16x32xf32>
    %cst_63 = arith.constant dense<0.000000e+00> : vector<8x32xf32>
    %131 = tpu.matmul %129, %130, %cst_63 {dimension_numbers = #tpu.dot_dimension_numbers<[1], [0], [0], [1], [0, 0, 1, 1], [], []>} : vector<8x16xf32>, vector<16x32xf32>, vector<8x32xf32> -> vector<8x32xf32>
    %132 = arith.addf %115, %131 : vector<8x32xf32>
    %133 = vector.extract_strided_slice %26 {offsets = [8, 0], sizes = [8, 32], strides = [1, 1]} : vector<16x32xf32> to vector<8x32xf32>
    %cst_64 = arith.constant dense<0.000000e+00> : vector<16x32xf32>
    %134 = tpu.matmul %33, %133, %cst_64 {dimension_numbers = #tpu.dot_dimension_numbers<[1], [0], [0], [1], [0, 0, 1, 1], [], []>} : vector<16x8xf32>, vector<8x32xf32>, vector<16x32xf32> -> vector<16x32xf32>
    %c1 = arith.constant 1 : index
    %c0_65 = arith.constant 0 : index
    %c0_66 = arith.constant 0 : index
    %135 = vector.load %arg4[%c1, %c0_65, %c0_66] : memref<2x16x32xf32, #tpu.memory_space<vmem>>, vector<1x16x32xf32>
    %136 = vector.shape_cast %135 : vector<1x16x32xf32> to vector<16x32xf32>
    %137 = vector.shape_cast %37 : vector<16x1xi1> to vector<16x1xi1>
    %138 = vector.broadcast %137 : vector<16x1xi1> to vector<16x32xi1>
    %139 = arith.select %138, %134, %136 : vector<16x32xi1>, vector<16x32xf32>
    %140 = vector.extract_strided_slice %27 {offsets = [8, 0], sizes = [8, 32], strides = [1, 1]} : vector<16x32xf32> to vector<8x32xf32>
    %cst_67 = arith.constant dense<0.000000e+00> : vector<16x32xf32>
    %141 = tpu.matmul %33, %140, %cst_67 {dimension_numbers = #tpu.dot_dimension_numbers<[1], [0], [0], [1], [0, 0, 1, 1], [], []>} : vector<16x8xf32>, vector<8x32xf32>, vector<16x32xf32> -> vector<16x32xf32>
    %c1_68 = arith.constant 1 : index
    %c0_69 = arith.constant 0 : index
    %c0_70 = arith.constant 0 : index
    %142 = vector.load %arg5[%c1_68, %c0_69, %c0_70] : memref<2x16x32xf32, #tpu.memory_space<vmem>>, vector<1x16x32xf32>
    %143 = vector.shape_cast %142 : vector<1x16x32xf32> to vector<16x32xf32>
    %144 = vector.shape_cast %37 : vector<16x1xi1> to vector<16x1xi1>
    %145 = vector.broadcast %144 : vector<16x1xi1> to vector<16x32xi1>
    %146 = arith.select %145, %141, %143 : vector<16x32xi1>, vector<16x32xf32>
    %c1_71 = arith.constant 1 : index
    %c0_72 = arith.constant 0 : index
    %c0_73 = arith.constant 0 : index
    %147 = vector.load %arg17[%c1_71, %c0_72, %c0_73] : memref<2x16x32xf32, #tpu.memory_space<vmem>>, vector<1x16x32xf32>
    %148 = vector.shape_cast %147 : vector<1x16x32xf32> to vector<16x32xf32>
    %149 = vector.shape_cast %139 : vector<16x32xf32> to vector<1x16x32xf32>
    tpu.vector_store %arg17[%c1_71, %c0_72, %c0_73], %149 {strides = array<i32>} : memref<2x16x32xf32, #tpu.memory_space<vmem>>, vector<1x16x32xf32>,
    %c1_74 = arith.constant 1 : index
    %c0_75 = arith.constant 0 : index
    %c0_76 = arith.constant 0 : index
    %150 = vector.load %arg18[%c1_74, %c0_75, %c0_76] : memref<2x16x32xf32, #tpu.memory_space<vmem>>, vector<1x16x32xf32>
    %151 = vector.shape_cast %150 : vector<1x16x32xf32> to vector<16x32xf32>
    %152 = vector.shape_cast %146 : vector<16x32xf32> to vector<1x16x32xf32>
    tpu.vector_store %arg18[%c1_74, %c0_75, %c0_76], %152 {strides = array<i32>} : memref<2x16x32xf32, #tpu.memory_space<vmem>>, vector<1x16x32xf32>,
    %c1_77 = arith.constant 1 : index
    %c0_78 = arith.constant 0 : index
    %c0_79 = arith.constant 0 : index
    %153 = vector.load %arg3[%c1_77, %c0_78, %c0_79] : memref<2x8x16xf32, #tpu.memory_space<vmem>>, vector<1x8x16xf32>
    %154 = vector.shape_cast %153 : vector<1x8x16xf32> to vector<8x16xf32>
    %cst_80 = arith.constant 0.000000e+00 : f32
    %155 = vector.broadcast %cst_80 : f32 to vector<8x32xf32>
    %156 = vector.extract_strided_slice %139 {offsets = [0, 0], sizes = [16, 16], strides = [1, 1]} : vector<16x32xf32> to vector<16x16xf32>
    %157 = vector.extract_strided_slice %146 {offsets = [0, 0], sizes = [16, 16], strides = [1, 1]} : vector<16x32xf32> to vector<16x16xf32>
    %158 = vector.extract_strided_slice %25 {offsets = [8, 0], sizes = [8, 16], strides = [1, 1]} : vector<16x64xf32> to vector<8x16xf32>
    %cst_81 = arith.constant dense<0.000000e+00> : vector<8x16xf32>
    %159 = tpu.matmul %158, %156, %cst_81 {dimension_numbers = #tpu.dot_dimension_numbers<[1], [1], [0], [0], [0, 0, 1, 0], [], []>} : vector<8x16xf32>, vector<16x16xf32>, vector<8x16xf32> -> vector<8x16xf32>
    %cst_82 = arith.constant 2.000000e-02 : f32
    %160 = vector.broadcast %cst_82 : f32 to vector<8x16xf32>
    %161 = arith.mulf %159, %160 : vector<8x16xf32>
    %162 = math.tanh %161 : vector<8x16xf32>
    %cst_83 = arith.constant 5.000000e+01 : f32
    %163 = vector.broadcast %cst_83 : f32 to vector<8x16xf32>
    %164 = arith.mulf %162, %163 : vector<8x16xf32>
    %165 = arith.addf %164, %154 : vector<8x16xf32>
    %166 = math.exp %165 : vector<8x16xf32>
    %cst_84 = arith.constant dense<0.000000e+00> : vector<8xf32>
    %167 = vector.multi_reduction <add>, %166, %cst_84 [1] : vector<8x16xf32> to vector<8xf32>
    %168 = vector.shape_cast %167 : vector<8xf32> to vector<8x1xf32>
    %169 = vector.broadcast %168 : vector<8x1xf32> to vector<8x16xf32>
    %170 = arith.divf %166, %169 : vector<8x16xf32>
    %cst_85 = arith.constant dense<0.000000e+00> : vector<8x16xf32>
    %171 = tpu.matmul %170, %157, %cst_85 {dimension_numbers = #tpu.dot_dimension_numbers<[1], [0], [0], [1], [0, 0, 1, 1], [], []>} : vector<8x16xf32>, vector<16x16xf32>, vector<8x16xf32> -> vector<8x16xf32>
    %c0_86 = arith.constant 0 : index
    %c0_87 = arith.constant 0 : index
    %172 = vector.load %arg10[%c0_86, %c0_87] : memref<64x32xf32, #tpu.memory_space<vmem>>, vector<16x32xf32>
    %cst_88 = arith.constant dense<0.000000e+00> : vector<8x32xf32>
    %173 = tpu.matmul %171, %172, %cst_88 {dimension_numbers = #tpu.dot_dimension_numbers<[1], [0], [0], [1], [0, 0, 1, 1], [], []>} : vector<8x16xf32>, vector<16x32xf32>, vector<8x32xf32> -> vector<8x32xf32>
    %174 = arith.addf %155, %173 : vector<8x32xf32>
    %175 = vector.extract_strided_slice %25 {offsets = [8, 16], sizes = [8, 16], strides = [1, 1]} : vector<16x64xf32> to vector<8x16xf32>
    %cst_89 = arith.constant dense<0.000000e+00> : vector<8x16xf32>
    %176 = tpu.matmul %175, %156, %cst_89 {dimension_numbers = #tpu.dot_dimension_numbers<[1], [1], [0], [0], [0, 0, 1, 0], [], []>} : vector<8x16xf32>, vector<16x16xf32>, vector<8x16xf32> -> vector<8x16xf32>
    %cst_90 = arith.constant 2.000000e-02 : f32
    %177 = vector.broadcast %cst_90 : f32 to vector<8x16xf32>
    %178 = arith.mulf %176, %177 : vector<8x16xf32>
    %179 = math.tanh %178 : vector<8x16xf32>
    %cst_91 = arith.constant 5.000000e+01 : f32
    %180 = vector.broadcast %cst_91 : f32 to vector<8x16xf32>
    %181 = arith.mulf %179, %180 : vector<8x16xf32>
    %182 = arith.addf %181, %154 : vector<8x16xf32>
    %183 = math.exp %182 : vector<8x16xf32>
    %cst_92 = arith.constant dense<0.000000e+00> : vector<8xf32>
    %184 = vector.multi_reduction <add>, %183, %cst_92 [1] : vector<8x16xf32> to vector<8xf32>
    %185 = vector.shape_cast %184 : vector<8xf32> to vector<8x1xf32>
    %186 = vector.broadcast %185 : vector<8x1xf32> to vector<8x16xf32>
    %187 = arith.divf %183, %186 : vector<8x16xf32>
    %cst_93 = arith.constant dense<0.000000e+00> : vector<8x16xf32>
    %188 = tpu.matmul %187, %157, %cst_93 {dimension_numbers = #tpu.dot_dimension_numbers<[1], [0], [0], [1], [0, 0, 1, 1], [], []>} : vector<8x16xf32>, vector<16x16xf32>, vector<8x16xf32> -> vector<8x16xf32>
    %c16_94 = arith.constant 16 : index
    %c0_95 = arith.constant 0 : index
    %189 = vector.load %arg10[%c16_94, %c0_95] : memref<64x32xf32, #tpu.memory_space<vmem>>, vector<16x32xf32>
    %cst_96 = arith.constant dense<0.000000e+00> : vector<8x32xf32>
    %190 = tpu.matmul %188, %189, %cst_96 {dimension_numbers = #tpu.dot_dimension_numbers<[1], [0], [0], [1], [0, 0, 1, 1], [], []>} : vector<8x16xf32>, vector<16x32xf32>, vector<8x32xf32> -> vector<8x32xf32>
    %191 = arith.addf %174, %190 : vector<8x32xf32>
    %192 = vector.extract_strided_slice %139 {offsets = [0, 16], sizes = [16, 16], strides = [1, 1]} : vector<16x32xf32> to vector<16x16xf32>
    %193 = vector.extract_strided_slice %146 {offsets = [0, 16], sizes = [16, 16], strides = [1, 1]} : vector<16x32xf32> to vector<16x16xf32>
    %194 = vector.extract_strided_slice %25 {offsets = [8, 32], sizes = [8, 16], strides = [1, 1]} : vector<16x64xf32> to vector<8x16xf32>
    %cst_97 = arith.constant dense<0.000000e+00> : vector<8x16xf32>
    %195 = tpu.matmul %194, %192, %cst_97 {dimension_numbers = #tpu.dot_dimension_numbers<[1], [1], [0], [0], [0, 0, 1, 0], [], []>} : vector<8x16xf32>, vector<16x16xf32>, vector<8x16xf32> -> vector<8x16xf32>
    %cst_98 = arith.constant 2.000000e-02 : f32
    %196 = vector.broadcast %cst_98 : f32 to vector<8x16xf32>
    %197 = arith.mulf %195, %196 : vector<8x16xf32>
    %198 = math.tanh %197 : vector<8x16xf32>
    %cst_99 = arith.constant 5.000000e+01 : f32
    %199 = vector.broadcast %cst_99 : f32 to vector<8x16xf32>
    %200 = arith.mulf %198, %199 : vector<8x16xf32>
    %201 = arith.addf %200, %154 : vector<8x16xf32>
    %202 = math.exp %201 : vector<8x16xf32>
    %cst_100 = arith.constant dense<0.000000e+00> : vector<8xf32>
    %203 = vector.multi_reduction <add>, %202, %cst_100 [1] : vector<8x16xf32> to vector<8xf32>
    %204 = vector.shape_cast %203 : vector<8xf32> to vector<8x1xf32>
    %205 = vector.broadcast %204 : vector<8x1xf32> to vector<8x16xf32>
    %206 = arith.divf %202, %205 : vector<8x16xf32>
    %cst_101 = arith.constant dense<0.000000e+00> : vector<8x16xf32>
    %207 = tpu.matmul %206, %193, %cst_101 {dimension_numbers = #tpu.dot_dimension_numbers<[1], [0], [0], [1], [0, 0, 1, 1], [], []>} : vector<8x16xf32>, vector<16x16xf32>, vector<8x16xf32> -> vector<8x16xf32>
    %c32_102 = arith.constant 32 : index
    %c0_103 = arith.constant 0 : index
    %208 = vector.load %arg10[%c32_102, %c0_103] : memref<64x32xf32, #tpu.memory_space<vmem>>, vector<16x32xf32>
    %cst_104 = arith.constant dense<0.000000e+00> : vector<8x32xf32>
    %209 = tpu.matmul %207, %208, %cst_104 {dimension_numbers = #tpu.dot_dimension_numbers<[1], [0], [0], [1], [0, 0, 1, 1], [], []>} : vector<8x16xf32>, vector<16x32xf32>, vector<8x32xf32> -> vector<8x32xf32>
    %210 = arith.addf %191, %209 : vector<8x32xf32>
    %211 = vector.extract_strided_slice %25 {offsets = [8, 48], sizes = [8, 16], strides = [1, 1]} : vector<16x64xf32> to vector<8x16xf32>
    %cst_105 = arith.constant dense<0.000000e+00> : vector<8x16xf32>
    %212 = tpu.matmul %211, %192, %cst_105 {dimension_numbers = #tpu.dot_dimension_numbers<[1], [1], [0], [0], [0, 0, 1, 0], [], []>} : vector<8x16xf32>, vector<16x16xf32>, vector<8x16xf32> -> vector<8x16xf32>
    %cst_106 = arith.constant 2.000000e-02 : f32
    %213 = vector.broadcast %cst_106 : f32 to vector<8x16xf32>
    %214 = arith.mulf %212, %213 : vector<8x16xf32>
    %215 = math.tanh %214 : vector<8x16xf32>
    %cst_107 = arith.constant 5.000000e+01 : f32
    %216 = vector.broadcast %cst_107 : f32 to vector<8x16xf32>
    %217 = arith.mulf %215, %216 : vector<8x16xf32>
    %218 = arith.addf %217, %154 : vector<8x16xf32>
    %219 = math.exp %218 : vector<8x16xf32>
    %cst_108 = arith.constant dense<0.000000e+00> : vector<8xf32>
    %220 = vector.multi_reduction <add>, %219, %cst_108 [1] : vector<8x16xf32> to vector<8xf32>
    %221 = vector.shape_cast %220 : vector<8xf32> to vector<8x1xf32>
    %222 = vector.broadcast %221 : vector<8x1xf32> to vector<8x16xf32>
    %223 = arith.divf %219, %222 : vector<8x16xf32>
    %cst_109 = arith.constant dense<0.000000e+00> : vector<8x16xf32>
    %224 = tpu.matmul %223, %193, %cst_109 {dimension_numbers = #tpu.dot_dimension_numbers<[1], [0], [0], [1], [0, 0, 1, 1], [], []>} : vector<8x16xf32>, vector<16x16xf32>, vector<8x16xf32> -> vector<8x16xf32>
    %c48_110 = arith.constant 48 : index
    %c0_111 = arith.constant 0 : index
    %225 = vector.load %arg10[%c48_110, %c0_111] : memref<64x32xf32, #tpu.memory_space<vmem>>, vector<16x32xf32>
    %cst_112 = arith.constant dense<0.000000e+00> : vector<8x32xf32>
    %226 = tpu.matmul %224, %225, %cst_112 {dimension_numbers = #tpu.dot_dimension_numbers<[1], [0], [0], [1], [0, 0, 1, 1], [], []>} : vector<8x16xf32>, vector<16x32xf32>, vector<8x32xf32> -> vector<8x32xf32>
    %227 = arith.addf %210, %226 : vector<8x32xf32>
    %228 = tpu.concatenate %132, %227 in 0 : vector<8x32xf32>, vector<8x32xf32> -> vector<16x32xf32>
    %c0_113 = arith.constant 0 : index
    %c0_114 = arith.constant 0 : index
    %229 = vector.load %arg11[%c0_113, %c0_114] : memref<1x32xf32, #tpu.memory_space<vmem>>, vector<1x32xf32>
    %230 = arith.mulf %228, %228 : vector<16x32xf32>
    %cst_115 = arith.constant dense<0.000000e+00> : vector<16xf32>
    %231 = vector.multi_reduction <add>, %230, %cst_115 [1] : vector<16x32xf32> to vector<16xf32>
    %232 = vector.shape_cast %231 : vector<16xf32> to vector<16x1xf32>
    %cst_116 = arith.constant 3.200000e+01 : f32
    %233 = vector.broadcast %cst_116 : f32 to vector<16x1xf32>
    %234 = arith.divf %232, %233 : vector<16x1xf32>
    %cst_117 = arith.constant 9.99999997E-7 : f32
    %235 = vector.broadcast %cst_117 : f32 to vector<16x1xf32>
    %236 = arith.addf %234, %235 : vector<16x1xf32>
    %237 = math.rsqrt %236 : vector<16x1xf32>
    %238 = vector.broadcast %237 : vector<16x1xf32> to vector<16x32xf32>
    %239 = arith.mulf %228, %238 : vector<16x32xf32>
    %cst_118 = arith.constant 1.000000e+00 : f32
    %240 = vector.broadcast %cst_118 : f32 to vector<1x32xf32>
    %241 = arith.addf %240, %229 : vector<1x32xf32>
    %242 = vector.broadcast %241 : vector<1x32xf32> to vector<16x32xf32>
    %243 = arith.mulf %239, %242 : vector<16x32xf32>
    %244 = arith.addf %0, %243 : vector<16x32xf32>
    %c0_119 = arith.constant 0 : index
    %c0_120 = arith.constant 0 : index
    %245 = vector.load %arg12[%c0_119, %c0_120] : memref<1x32xf32, #tpu.memory_space<vmem>>, vector<1x32xf32>
    %246 = arith.mulf %244, %244 : vector<16x32xf32>
    %cst_121 = arith.constant dense<0.000000e+00> : vector<16xf32>
    %247 = vector.multi_reduction <add>, %246, %cst_121 [1] : vector<16x32xf32> to vector<16xf32>
    %248 = vector.shape_cast %247 : vector<16xf32> to vector<16x1xf32>
    %cst_122 = arith.constant 3.200000e+01 : f32
    %249 = vector.broadcast %cst_122 : f32 to vector<16x1xf32>
    %250 = arith.divf %248, %249 : vector<16x1xf32>
    %cst_123 = arith.constant 9.99999997E-7 : f32
    %251 = vector.broadcast %cst_123 : f32 to vector<16x1xf32>
    %252 = arith.addf %250, %251 : vector<16x1xf32>
    %253 = math.rsqrt %252 : vector<16x1xf32>
    %254 = vector.broadcast %253 : vector<16x1xf32> to vector<16x32xf32>
    %255 = arith.mulf %244, %254 : vector<16x32xf32>
    %cst_124 = arith.constant 1.000000e+00 : f32
    %256 = vector.broadcast %cst_124 : f32 to vector<1x32xf32>
    %257 = arith.addf %256, %245 : vector<1x32xf32>
    %258 = vector.broadcast %257 : vector<1x32xf32> to vector<16x32xf32>
    %259 = arith.mulf %255, %258 : vector<16x32xf32>
    %c0_125 = arith.constant 0 : index
    %c0_126 = arith.constant 0 : index
    %260 = vector.load %arg13[%c0_125, %c0_126] : memref<32x128xf32, #tpu.memory_space<vmem>>, vector<32x128xf32>
    %cst_127 = arith.constant dense<0.000000e+00> : vector<16x128xf32>
    %261 = tpu.matmul %259, %260, %cst_127 {dimension_numbers = #tpu.dot_dimension_numbers<[1], [0], [0], [1], [0, 0, 1, 1], [], []>} : vector<16x32xf32>, vector<32x128xf32>, vector<16x128xf32> -> vector<16x128xf32>
    %262 = vector.extract_strided_slice %261 {offsets = [0, 0], sizes = [16, 64], strides = [1, 1]} : vector<16x128xf32> to vector<16x64xf32>
    %cst_128 = arith.constant 5.000000e-01 : f32
    %263 = vector.broadcast %cst_128 : f32 to vector<16x64xf32>
    %264 = arith.mulf %263, %262 : vector<16x64xf32>
    %cst_129 = arith.constant 4.471500e-02 : f32
    %265 = vector.broadcast %cst_129 : f32 to vector<16x64xf32>
    %266 = arith.mulf %265, %262 : vector<16x64xf32>
    %267 = arith.mulf %266, %262 : vector<16x64xf32>
    %268 = arith.mulf %267, %262 : vector<16x64xf32>
    %269 = arith.addf %262, %268 : vector<16x64xf32>
    %cst_130 = arith.constant 0.797884583 : f32
    %270 = vector.broadcast %cst_130 : f32 to vector<16x64xf32>
    %271 = arith.mulf %270, %269 : vector<16x64xf32>
    %272 = math.tanh %271 : vector<16x64xf32>
    %cst_131 = arith.constant 1.000000e+00 : f32
    %273 = vector.broadcast %cst_131 : f32 to vector<16x64xf32>
    %274 = arith.addf %273, %272 : vector<16x64xf32>
    %275 = arith.mulf %264, %274 : vector<16x64xf32>
    %276 = vector.extract_strided_slice %261 {offsets = [0, 64], sizes = [16, 64], strides = [1, 1]} : vector<16x128xf32> to vector<16x64xf32>
    %277 = arith.mulf %275, %276 : vector<16x64xf32>
    %c0_132 = arith.constant 0 : index
    %c0_133 = arith.constant 0 : index
    %278 = vector.load %arg14[%c0_132, %c0_133] : memref<64x32xf32, #tpu.memory_space<vmem>>, vector<64x32xf32>
    %cst_134 = arith.constant dense<0.000000e+00> : vector<16x32xf32>
    %279 = tpu.matmul %277, %278, %cst_134 {dimension_numbers = #tpu.dot_dimension_numbers<[1], [0], [0], [1], [0, 0, 1, 1], [], []>} : vector<16x64xf32>, vector<64x32xf32>, vector<16x32xf32> -> vector<16x32xf32>
    %c0_135 = arith.constant 0 : index
    %c0_136 = arith.constant 0 : index
    %280 = vector.load %arg15[%c0_135, %c0_136] : memref<1x32xf32, #tpu.memory_space<vmem>>, vector<1x32xf32>
    %281 = arith.mulf %279, %279 : vector<16x32xf32>
    %cst_137 = arith.constant dense<0.000000e+00> : vector<16xf32>
    %282 = vector.multi_reduction <add>, %281, %cst_137 [1] : vector<16x32xf32> to vector<16xf32>
    %283 = vector.shape_cast %282 : vector<16xf32> to vector<16x1xf32>
    %cst_138 = arith.constant 3.200000e+01 : f32
    %284 = vector.broadcast %cst_138 : f32 to vector<16x1xf32>
    %285 = arith.divf %283, %284 : vector<16x1xf32>
    %cst_139 = arith.constant 9.99999997E-7 : f32
    %286 = vector.broadcast %cst_139 : f32 to vector<16x1xf32>
    %287 = arith.addf %285, %286 : vector<16x1xf32>
    %288 = math.rsqrt %287 : vector<16x1xf32>
    %289 = vector.broadcast %288 : vector<16x1xf32> to vector<16x32xf32>
    %290 = arith.mulf %279, %289 : vector<16x32xf32>
    %cst_140 = arith.constant 1.000000e+00 : f32
    %291 = vector.broadcast %cst_140 : f32 to vector<1x32xf32>
    %292 = arith.addf %291, %280 : vector<1x32xf32>
    %293 = vector.broadcast %292 : vector<1x32xf32> to vector<16x32xf32>
    %294 = arith.mulf %290, %293 : vector<16x32xf32>
    %295 = arith.addf %244, %294 : vector<16x32xf32>
    %c0_141 = arith.constant 0 : index
    %c0_142 = arith.constant 0 : index
    %296 = vector.load %arg16[%c0_141, %c0_142] : memref<16x32xf32, #tpu.memory_space<vmem>>, vector<16x32xf32>
    tpu.vector_store %arg16[%c0_141, %c0_142], %295 {strides = array<i32>} : memref<16x32xf32, #tpu.memory_space<vmem>>, vector<16x32xf32>,
    return
  }
  func.func @transform_0(%arg0: i32) -> (i32, i32) {
    %c0_i32 = arith.constant 0 : i32
    %c0_i32_0 = arith.constant 0 : i32
    %c0_i32_1 = arith.constant 0 : i32
    return %c0_i32, %c0_i32_0 : i32, i32
  }
  func.func @transform_1(%arg0: i32) -> (i32, i32) {
    %c0_i32 = arith.constant 0 : i32
    %c0_i32_0 = arith.constant 0 : i32
    %c0_i32_1 = arith.constant 0 : i32
    return %c0_i32, %c0_i32_0 : i32, i32
  }
  func.func @transform_2(%arg0: i32) -> (i32, i32, i32) {
    %c0_i32 = arith.constant 0 : i32
    %c0_i32_0 = arith.constant 0 : i32
    %c0_i32_1 = arith.constant 0 : i32
    %c0_i32_2 = arith.constant 0 : i32
    return %c0_i32, %c0_i32_0, %c0_i32_1 : i32, i32, i32
  }
  func.func @transform_3(%arg0: i32) -> (i32, i32, i32) {
    %c0_i32 = arith.constant 0 : i32
    %c0_i32_0 = arith.constant 0 : i32
    %c0_i32_1 = arith.constant 0 : i32
    %c0_i32_2 = arith.constant 0 : i32
    return %c0_i32, %c0_i32_0, %c0_i32_1 : i32, i32, i32
  }
  func.func @transform_4(%arg0: i32) -> (i32, i32, i32) {
    %c0_i32 = arith.constant 0 : i32
    %c0_i32_0 = arith.constant 0 : i32
    %c0_i32_1 = arith.constant 0 : i32
    %c0_i32_2 = arith.constant 0 : i32
    return %c0_i32, %c0_i32_0, %c0_i32_1 : i32, i32, i32
  }
  func.func @transform_5(%arg0: i32) -> (i32, i32) {
    %c0_i32 = arith.constant 0 : i32
    %c0_i32_0 = arith.constant 0 : i32
    %c0_i32_1 = arith.constant 0 : i32
    return %c0_i32, %c0_i32_0 : i32, i32
  }
  func.func @transform_6(%arg0: i32) -> (i32, i32) {
    %c0_i32 = arith.constant 0 : i32
    %c0_i32_0 = arith.constant 0 : i32
    %c0_i32_1 = arith.constant 0 : i32
    return %c0_i32, %c0_i32_0 : i32, i32
  }
  func.func @transform_7(%arg0: i32) -> (i32, i32) {
    %c0_i32 = arith.constant 0 : i32
    %c0_i32_0 = arith.constant 0 : i32
    %c0_i32_1 = arith.constant 0 : i32
    return %c0_i32, %c0_i32_0 : i32, i32
  }
  func.func @transform_8(%arg0: i32) -> (i32, i32) {
    %c0_i32 = arith.constant 0 : i32
    %c0_i32_0 = arith.constant 0 : i32
    %c0_i32_1 = arith.constant 0 : i32
    return %c0_i32, %c0_i32_0 : i32, i32
  }
  func.func @transform_9(%arg0: i32) -> (i32, i32) {
    %c0_i32 = arith.constant 0 : i32
    %c0_i32_0 = arith.constant 0 : i32
    %c0_i32_1 = arith.constant 0 : i32
    return %c0_i32, %c0_i32_0 : i32, i32
  }
  func.func @transform_10(%arg0: i32) -> (i32, i32) {
    %c0_i32 = arith.constant 0 : i32
    %c0_i32_0 = arith.constant 0 : i32
    %c0_i32_1 = arith.constant 0 : i32
    return %c0_i32, %c0_i32_0 : i32, i32
  }
  func.func @transform_11(%arg0: i32) -> (i32, i32) {
    %c0_i32 = arith.constant 0 : i32
    %c0_i32_0 = arith.constant 0 : i32
    %c0_i32_1 = arith.constant 0 : i32
    return %c0_i32, %c0_i32_0 : i32, i32
  }
  func.func @transform_12(%arg0: i32) -> (i32, i32) {
    %c0_i32 = arith.constant 0 : i32
    %c0_i32_0 = arith.constant 0 : i32
    %c0_i32_1 = arith.constant 0 : i32
    return %c0_i32, %c0_i32_0 : i32, i32
  }
  func.func @transform_13(%arg0: i32) -> (i32, i32) {
    %c0_i32 = arith.constant 0 : i32
    %c0_i32_0 = arith.constant 0 : i32
    %c0_i32_1 = arith.constant 0 : i32
    return %c0_i32, %c0_i32_0 : i32, i32
  }
  func.func @transform_14(%arg0: i32) -> (i32, i32) {
    %c0_i32 = arith.constant 0 : i32
    %c0_i32_0 = arith.constant 0 : i32
    %c0_i32_1 = arith.constant 0 : i32
    return %c0_i32, %c0_i32_0 : i32, i32
  }
  func.func @transform_15(%arg0: i32) -> (i32, i32) {
    %c0_i32 = arith.constant 0 : i32
    %c0_i32_0 = arith.constant 0 : i32
    %c0_i32_1 = arith.constant 0 : i32
    return %c0_i32, %c0_i32_0 : i32, i32
  }
  func.func @transform_16(%arg0: i32) -> (i32, i32, i32) {
    %c0_i32 = arith.constant 0 : i32
    %c0_i32_0 = arith.constant 0 : i32
    %c0_i32_1 = arith.constant 0 : i32
    %c0_i32_2 = arith.constant 0 : i32
    return %c0_i32, %c0_i32_0, %c0_i32_1 : i32, i32, i32
  }
  func.func @transform_17(%arg0: i32) -> (i32, i32, i32) {
    %c0_i32 = arith.constant 0 : i32
    %c0_i32_0 = arith.constant 0 : i32
    %c0_i32_1 = arith.constant 0 : i32
    %c0_i32_2 = arith.constant 0 : i32
    return %c0_i32, %c0_i32_0, %c0_i32_1 : i32, i32, i32
  }
}

</mosaic_0001>

<bundles_post_ra>
// kernel: tile.13
= control target key start
LH: loop header
LB: loop body
LE: loop exit
PB: predicated region body
PF: predicated region fallthrough
CT: control target
= control target key end

     0   :  { %s154_s0 = inlined_call_operand.vmem [shape: f32[8,16], index: 0, kind: input, shape index: {}]   ;;  %s155_s1 = inlined_call_operand.vmem [shape: f32[2,8,6,16], index: 1, kind: output, shape index: {}]  }
   0x1   :  { %v4_v0 = vld [vmem:[%s154_s0] ss:$0 sm:$0xff]  ;;  %v51_v1 = vld [vmem:[%s154_s0 + $0x1] ss:$0 sm:$0xff]  ;;  %v54_v2 = vld [vmem:[%s154_s0 + $0x2] ss:$0 sm:$0xff] }
   0x2   :  { %5 = vst [vmem:[%s155_s1] sm:$0xff] %v4_v0  ;;  %50 = vst [vmem:[%s155_s1 + $0x40] sm:$0xff] %v4_v0  ;;  %v57_v3 = vld [vmem:[%s154_s0 + $0x3] ss:$0 sm:$0xff]  ;;  %v60_v4 = vld [vmem:[%s154_s0 + $0x4] ss:$0 sm:$0xff] }
   0x3   :  { %52 = vst [vmem:[%s155_s1 + $0x8] sm:$0xff] %v51_v1  ;;  %53 = vst [vmem:[%s155_s1 + $0x48] sm:$0xff] %v51_v1  ;;  %v63_v5 = vld [vmem:[%s154_s0 + $0x5] ss:$0 sm:$0xff]  ;;  %v66_v6 = vld [vmem:[%s154_s0 + $0x6] ss:$0 sm:$0xff] }
   0x4   :  { %55 = vst [vmem:[%s155_s1 + $0x10] sm:$0xff] %v54_v2  ;;  %56 = vst [vmem:[%s155_s1 + $0x50] sm:$0xff] %v54_v2  ;;  %v69_v7 = vld [vmem:[%s154_s0 + $0x7] ss:$0 sm:$0xff] }
   0x5   :  { %58 = vst [vmem:[%s155_s1 + $0x18] sm:$0xff] %v57_v3  ;;  %59 = vst [vmem:[%s155_s1 + $0x58] sm:$0xff] %v57_v3 }
   0x6   :  { %61 = vst [vmem:[%s155_s1 + $0x20] sm:$0xff] %v60_v4  ;;  %62 = vst [vmem:[%s155_s1 + $0x60] sm:$0xff] %v60_v4 }
   0x7   :  { %64 = vst [vmem:[%s155_s1 + $0x28] sm:$0xff] %v63_v5  ;;  %65 = vst [vmem:[%s155_s1 + $0x68] sm:$0xff] %v63_v5 }
   0x8   :  { %67 = vst [vmem:[%s155_s1 + $0x30] sm:$0xff] %v66_v6  ;;  %68 = vst [vmem:[%s155_s1 + $0x70] sm:$0xff] %v66_v6 }
   0x9   :  { %70 = vst [vmem:[%s155_s1 + $0x38] sm:$0xff] %v69_v7  ;;  %71 = vst [vmem:[%s155_s1 + $0x78] sm:$0xff] %v69_v7 }

// kernel: tile.14
= control target key start
LH: loop header
LB: loop body
LE: loop exit
PB: predicated region body
PF: predicated region fallthrough
CT: control target
= control target key end

     0   :  { %vm4_vm0 = vcmask 1047556   ;;  %s155_s14 = smov 64   ;;  %s156_s19 = smov 80   ;;  %vm6_vm1 = vcmask 130048   ;;  %vm25_vm2 = vcmask 786048   ;;  %vm46_vm3 = vcmask 654848   ;;  %s292_s0 = inlined_call_operand.vmem [shape: f32[2,8,6,16], index: 0, kind: input, shape index: {}]   ;;  %s293_s1 = inlined_call_operand.vmem [shape: f32[16,96], index: 1, kind: output, shape index: {}]  }
   0x1   :  { %v130_v0 = vld [vmem:[%s292_s0 + $0x4] ss:$8 sm:$0xf]   ;;  %v125_v3 = vld [vmem:[%s292_s0 + $0x5] ss:$8 sm:$0xf]  }
   0x2   :  { %v131_v1 = vld [vmem:[%s292_s0 + $0x4] ss:$8 sm:$0xf0]   ;;  %v126_v4 = vld [vmem:[%s292_s0 + $0x5] ss:$8 sm:$0xf0]  }
   0x3   :  { %v43_v2 = vsel %vm4_vm0, %v131_v1, %v130_v0  ;;  %v22_v5 = vsel %vm4_vm0, %v126_v4, %v125_v3  ;;  %v132_v6 = vld [vmem:[%s292_s0 + $0x44] ss:$8 sm:$0xf]   ;;  %v127_v9 = vld [vmem:[%s292_s0 + $0x45] ss:$8 sm:$0xf]  }
   0x4   :  { %44 = vrot.lane.b32.xlu1 %v43_v2, %s155_s14  ;;  %v133_v7 = vld [vmem:[%s292_s0 + $0x44] ss:$8 sm:$0xf0]   ;;  %23 = vrot.lane.b32.xlu0 %v22_v5, %s156_s19  ;;  %v128_v10 = vld [vmem:[%s292_s0 + $0x45] ss:$8 sm:$0xf0]  }
   0x5   :  { %v53_v8 = vsel %vm4_vm0, %v133_v7, %v132_v6  ;;  %v32_v11 = vsel %vm4_vm0, %v128_v10, %v127_v9  ;;  %v137_v12 = vld [vmem:[%s292_s0 + $0x43] ss:$8 sm:$0xf]   ;;  %v142_v18 = vld [vmem:[%s292_s0 + $0x42] ss:$8 sm:$0xf]  }
   0x6   :  { %v138_v13 = vld [vmem:[%s292_s0 + $0x43] ss:$8 sm:$0xf0]   ;;  %v143_v19 = vld [vmem:[%s292_s0 + $0x42] ss:$8 sm:$0xf0]  }
   0x7   :  { %v135_v14 = vld [vmem:[%s292_s0 + $0x3] ss:$8 sm:$0xf]   ;;  %v74_v16 = vsel %vm4_vm0, %v138_v13, %v137_v12  ;;  %v140_v20 = vld [vmem:[%s292_s0 + $0x2] ss:$8 sm:$0xf]   ;;  %v95_v24 = vsel %vm4_vm0, %v143_v19, %v142_v18 }
   0x8   :  { %54 = vrot.lane.b32.xlu1 %v53_v8, %s155_s14  ;;  %v136_v15 = vld [vmem:[%s292_s0 + $0x3] ss:$8 sm:$0xf0]   ;;  %33 = vrot.lane.b32.xlu0 %v32_v11, %s156_s19  ;;  %v141_v21 = vld [vmem:[%s292_s0 + $0x2] ss:$8 sm:$0xf0]  }
   0x9   :  { %v64_v17 = vsel %vm4_vm0, %v136_v15, %v135_v14  ;;  %s157_s11 = smov 48   ;;  %v147_v22 = vld [vmem:[%s292_s0 + $0x41] ss:$8 sm:$0xf]   ;;  %v85_v27 = vsel %vm4_vm0, %v141_v21, %v140_v20  ;;  %s158_s29 = smov 32   ;;  %vm67_vm4 = vcmask 523648  }
   0xa   :  { %v148_v23 = vld [vmem:[%s292_s0 + $0x41] ss:$8 sm:$0xf0]   ;;  %v2_v25 = vld [vmem:[%s292_s0] ss:$8 sm:$0xf]  }
   0xb   :  { %v3_v26 = vld [vmem:[%s292_s0] ss:$8 sm:$0xf0]   ;;  %v145_v31 = vld [vmem:[%s292_s0 + $0x1] ss:$8 sm:$0xf]   ;;  %v116_v34 = vsel %vm4_vm0, %v148_v23, %v147_v22 }
   0xc   :  { %75 = vrot.lane.b32.xlu1 %v74_v16, %s157_s11  ;;  %65 = vrot.lane.b32.xlu0 %v64_v17, %s157_s11  ;;  %v5_v28 = vsel %vm4_vm0, %v3_v26, %v2_v25  ;;  %v122_v29 = vld [vmem:[%s292_s0 + $0x40] ss:$8 sm:$0xf]   ;;  %v146_v32 = vld [vmem:[%s292_s0 + $0x1] ss:$8 sm:$0xf0]  }
   0xd   :  { %v123_v30 = vld [vmem:[%s292_s0 + $0x40] ss:$8 sm:$0xf0]   ;;  %7 = vst.msk [vmem:[%s293_s1] sm:$0xff] %vm6_vm1, %v5_v28   ;;  %v106_v35 = vsel %vm4_vm0, %v146_v32, %v145_v31  ;;  %s159_s3 = smov 16   ;;  %vm88_vm5 = vcmask 392448  }
   0xe   :  { %v13_v33 = vsel %vm4_vm0, %v123_v30, %v122_v29  ;;  %vm109_vm6 = vcmask 261248  }
   0xf   :  { %124 = vst.msk [vmem:[%s293_s1 + $0x8] sm:$0xff] %vm6_vm1, %v13_v33  }
  0x10   :  { %96 = vrot.lane.b32.xlu1 %v95_v24, %s158_s29  ;;  %86 = vrot.lane.b32.xlu0 %v85_v27, %s158_s29 }
  0x14   :  { %117 = vrot.lane.b32.xlu1 %v116_v34, %s159_s3  ;;  %107 = vrot.lane.b32.xlu0 %v106_v35, %s159_s3 }
  0x76   :  { %v45_v36 = vpop.permute.xlu1 %44   ;;  %v24_v37 = vpop.permute.xlu0 %23  }
  0x77   :  { %26 = vst.msk [vmem:[%s293_s1] sm:$0xff] %vm25_vm2, %v24_v37  }
  0x78   :  { %47 = vst.msk [vmem:[%s293_s1] sm:$0xff] %vm46_vm3, %v45_v36  }
  0x7a   :  { %v55_v38 = vpop.permute.xlu1 %54   ;;  %v34_v39 = vpop.permute.xlu0 %33  }
  0x7b   :  { %129 = vst.msk [vmem:[%s293_s1 + $0x8] sm:$0xff] %vm25_vm2, %v34_v39  }
  0x7c   :  { %134 = vst.msk [vmem:[%s293_s1 + $0x8] sm:$0xff] %vm46_vm3, %v55_v38  }
  0x7e   :  { %v76_v40 = vpop.permute.xlu1 %75   ;;  %v66_v41 = vpop.permute.xlu0 %65  }
  0x7f   :  { %139 = vst.msk [vmem:[%s293_s1 + $0x8] sm:$0xff] %vm67_vm4, %v76_v40   ;;  %68 = vst.msk [vmem:[%s293_s1] sm:$0xff] %vm67_vm4, %v66_v41  }
  0x82   :  { %v97_v42 = vpop.permute.xlu1 %96   ;;  %v87_v43 = vpop.permute.xlu0 %86  }
  0x83   :  { %144 = vst.msk [vmem:[%s293_s1 + $0x8] sm:$0xff] %vm88_vm5, %v97_v42   ;;  %89 = vst.msk [vmem:[%s293_s1] sm:$0xff] %vm88_vm5, %v87_v43  }
  0x86   :  { %v118_v44 = vpop.permute.xlu1 %117   ;;  %v108_v45 = vpop.permute.xlu0 %107  }
  0x87   :  { %149 = vst.msk [vmem:[%s293_s1 + $0x8] sm:$0xff] %vm109_vm6, %v118_v44   ;;  %110 = vst.msk [vmem:[%s293_s1] sm:$0xff] %vm109_vm6, %v108_v45  }

// kernel: gemma2_block.1
= control target key start
LH: loop header
LB: loop body
LE: loop exit
PB: predicated region body
PF: predicated region fallthrough
CT: control target
= control target key end

     0   :  { %s3922_s0 = inlined_call_operand.vmem [shape: f32[16,32], index: 0, kind: input, shape index: {}]   ;;  %s3923_s1 = inlined_call_operand.vmem [shape: s32[1,8], index: 1, kind: input, shape index: {}]   ;;  %s3924_s2 = inlined_call_operand.vmem [shape: f32[2,8,16], index: 2, kind: input, shape index: {}]   ;;  %s3925_s3 = inlined_call_operand.vmem [shape: f32[2,16,32], index: 3, kind: input, shape index: {}, may-alias: {3,16}]   ;;  %s3926_s4 = inlined_call_operand.vmem [shape: f32[2,16,32], index: 4, kind: input, shape index: {}, may-alias: {4,17}]   ;;  %s3927_s5 = inlined_call_operand.vmem [shape: f32[16,96], index: 5, kind: input, shape index: {}]   ;;  %s3928_s6 = inlined_call_operand.vmem [shape: f32[16,96], index: 6, kind: input, shape index: {}]   ;;  %s3929_s7 = inlined_call_operand.vmem [shape: f32[1,32], index: 7, kind: input, shape index: {}]   ;;  %s3930_s8 = inlined_call_operand.vmem [shape: f32[32,256], index: 8, kind: input, shape index: {}]   ;;  %s3931_s9 = inlined_call_operand.vmem [shape: f32[64,32], index: 9, kind: input, shape index: {}]   ;;  %s3932_s10 = inlined_call_operand.vmem [shape: f32[1,32], index: 10, kind: input, shape index: {}]   ;;  %s3933_s11 = inlined_call_operand.vmem [shape: f32[1,32], index: 11, kind: input, shape index: {}]   ;;  %s3934_s12 = inlined_call_operand.vmem [shape: f32[32,128], index: 12, kind: input, shape index: {}]   ;;  %s3935_s13 = inlined_call_operand.vmem [shape: f32[64,32], index: 13, kind: input, shape index: {}]   ;;  %s3936_s14 = inlined_call_operand.vmem [shape: f32[1,32], index: 14, kind: input, shape index: {}]   ;;  %s3937_s15 = inlined_call_operand.hbm [shape: f32[16,32], index: 15, kind: output, shape index: {0}]   ;;  %s3938_s16 = inlined_call_operand.vmem [shape: f32[2,16,32], index: 16, kind: output, shape index: {1}, may-alias: {3,16}]   ;;  %s3939_s17 = inlined_call_operand.vmem [shape: f32[2,16,32], index: 17, kind: output, shape index: {2}, may-alias: {4,17}]  }
   0x1   :  { %3941 = sst [smem:[#allocation5_spill]] %s3922_s0 }
   0x2   :  { %3942 = sst [smem:[#allocation6_spill]] %s3923_s1 }
   0x3   :  { %s3943_s26 = sld [smem:[#allocation5_spill]]  ;;  %vm59_vm0 = vcmask 261120  }
   0x9   :  { %v3372_v0 = vld [vmem:[%s3943_s26] sm:$0xff] }
   0xa   :  { %23 = vsyncpa [#allocation3], 0  ;;  %v57_v1 = vmul.f32 %v3372_v0, %v3372_v0  ;;  %v91_v3 = vld [vmem:[%s3930_s8 + $0x38] sm:$0xff]  ;;  %v90_v4 = vld [vmem:[%s3930_s8 + $0x30] sm:$0xff]  ;;  %v3269_v7 = vmov 0.0   ;;  %v77_v12 = vlaneseq  ;;  %s3944_s19 = sld [smem:[#allocation6_spill]] }
   0xb   :  { %v89_v5 = vld [vmem:[%s3930_s8 + $0x28] sm:$0xff]  ;;  %122 = vmatprep.subr.mxu0 %v91_v3  ;;  %v88_v6 = vld [vmem:[%s3930_s8 + $0x20] sm:$0xff]  ;;  %162 = vmatprep.mubr.f32.mxu0 %v3269_v7  ;;  %v87_v8 = vld [vmem:[%s3930_s8 + $0x18] sm:$0xff]  ;;  %vm199_vm3 = vcmask 64512   ;;  %s3270_s22 = smov 32   ;;  %s3271_s23 = smov 64  }
   0xc   :  { %v60_v2 = vsel %vm59_vm0, %v57_v1, 0.0  ;;  %123 = vmatpush1.msra.mxu0 %v90_v4  ;;  %v86_v9 = vld [vmem:[%s3930_s8 + $0x10] sm:$0xff]  ;;  %v85_v10 = vld [vmem:[%s3930_s8 + $0x8] sm:$0xff]  ;;  %v84_v11 = vld [vmem:[%s3930_s8] sm:$0xff]  ;;  %v78_v13 = vshrl.u32 %v77_v12, 7  ;;  %s3272_s24 = smov 112  }
   0xd   :  { %61 = vadd.xlane.f32.xlu0 %v60_v2  ;;  %124 = vmatprep.subr.mxu0 %v89_v5  ;;  %v3406_v14 = vld [vmem:[%s3943_s26 + $0x8] sm:$0xff]  ;;  %v56_v26 = vld [vmem:[%s3929_s7] sm:$0x1]  ;;  %vm3273_vm4 = vmmov 0   ;;  %vm389_vm5 = vcmask 130048   ;;  %s3274_s0 = smov 96  }
   0xe   :  { %125 = vmatpush1.msra.mxu0 %v88_v6  ;;  %v187_v15 = vadd.s32 8, %v78_v13  ;;  %v58_v17 = vmul.f32 %v3406_v14, %v3406_v14  ;;  %v75_v27 = vadd.f32 1.0, %v56_v26  ;;  %v3429_v28 = vsub.s32 0, %v78_v13  ;;  %v175_v34 = vld [vmem:[%s3927_s5] sm:$0xff]  ;;  %v294_v50 = vld [vmem:[%s3925_s3 + $0x8] sm:$0xff]  ;;  %s3275_s30 = smov 80  }
   0xf   :  { %126 = vmatprep.subr.mxu0 %v87_v8  ;;  %v179_v35 = vld [vmem:[%s3928_s6] sm:$0xff]  ;;  %v381_v55 = vld [vmem:[%s3926_s4 + $0x8] sm:$0xff]  ;;  %vm2649_vm8 = vcmask 523264  }
  0x10   :  { %127 = vmatpush1.msra.mxu0 %v86_v9  ;;  %v2787_v16 = vld [vmem:[%s3944_s19] ss:$0 sm:$0xff]  ;;  %v63_v19 = vsel %vm59_vm0, %v58_v17, 0.0  ;;  %v80_v29 = vrot.slane %v75_v27, %v3429_v28  ;;  %v180_v26 = vld [vmem:[%s3928_s6 + $0x8] sm:$0xff] }
  0x11   :  { %128 = vmatprep.subr.mxu0 %v85_v10  ;;  %vm193_vm1 = vcmp.eq.s32.totalorder %v78_v13, %v2787_v16  ;;  %vm194_vm2 = vcmp.eq.s32.totalorder %v187_v15, %v2787_v16  ;;  %64 = vadd.xlane.f32.xlu1 %v63_v19  ;;  %v293_v52 = vld [vmem:[%s3925_s3] sm:$0xff]  ;;  %v3554_v27 = vld [vmem:[%s3931_s9 + $0x8] sm:$0xff] }
  0x12   :  { %129 = vmatpush1.msra.mxu0 %v84_v11  ;;  %v3414_v18 = vsel %vm193_vm1, 1.0, %v3269_v7  ;;  %v3418_v20 = vsel %vm194_vm2, 1.0, %v3269_v7  ;;  %v380_v58 = vld [vmem:[%s3926_s4] sm:$0xff] }
  0x13   :  { %2961 = vmatprep.subr.mxu0 %v3269_v7  ;;  %2953 = vmatprep.mubr.msk.f32.mxu1 %vm199_vm3, %v3414_v18  ;;  %v203_v21 = vsel %vm199_vm3, %v3418_v20, -inf  ;;  %v200_v22 = vsel %vm199_vm3, %v3414_v18, -inf  ;;  %v3533_v10 = vld [vmem:[%s3924_s2] sm:$0xff] }
  0x15   :  { %204 = vmax.xlane.f32.xlu1 %v203_v21 }
  0x19   :  { %201 = vmax.xlane.f32.xlu1 %v200_v22 }
  0x96   :  { %v62_v23 = vpop.xlane.xlu0 %61 }
  0x97   :  { %v67_v24 = vmul.f32 0.03125, %v62_v23 }
  0x99   :  { %v69_v25 = vadd.f32 1e-06, %v67_v24 }
  0x9a   :  { %v65_v40 = vpop.xlane.xlu1 %64 }
  0x9b   :  { %3179 = vrsqrt.f32 %v69_v25  ;;  %v68_v45 = vmul.f32 0.03125, %v65_v40  ;;  %v176_v25 = vld [vmem:[%s3927_s5 + $0x8] sm:$0xff]  ;;  %v3594_v40 = vld [vmem:[%s3931_s9 + $0x10] sm:$0xff] }
  0x9d   :  { %v70_v46 = vadd.f32 1e-06, %v68_v45 }
  0x9e   :  { %v3448_v41 = vpop.xlane.xlu1 %204 }
  0x9f   :  { %3181 = vrsqrt.f32 %v70_v46  ;;  %vm207_vm6 = vcmp.gt.f32.partialorder %v3448_v41, 0.5 }
  0xa2   :  { %v3450_v42 = vpop.xlane.xlu1 %201 }
  0xa3   :  { %vm206_vm7 = vcmp.gt.f32.partialorder %v3450_v42, 0.5 }
  0xa8   :  { %v3180_v30 = vpop.eup %3179 }
  0xa9   :  { %v73_v31 = vmul.f32 %v3180_v30, %v3372_v0 }
  0xab   :  { %v82_v32 = vmul.f32 %v80_v29, %v73_v31 }
  0xac   :  { %v3182_v47 = vpop.eup %3181 }
  0xad   :  { %2785 = vmatmul.mubr.msk.f32.vlgmr.msra.gmra.mxu0 %vm59_vm0, %v82_v32  ;;  %v74_v48 = vmul.f32 %v3182_v47, %v3406_v14 }
  0xae   :  { %168 = vmatprep.mubr.f32.mxu0 %v3269_v7 }
  0xaf   :  { %v83_v49 = vmul.f32 %v80_v29, %v74_v48  ;;  %v3559_v29 = vld [vmem:[%s3931_s9] sm:$0xff] }
  0xb1   :  { %2786 = vmatmul.mubr.msk.f32.gmra.mxu0 %vm59_vm0, %v83_v49 }
  0xb2   :  { %2965 = vmatprep.mubr.msk.f32.mxu0 %vm3273_vm4, %v3269_v7 }
 0x16d   :  { %v164_v33 = vpop.f32.mrf.mxu0 }
 0x16e   :  { %302 = vrot.lane.b32.xlu1 %v164_v33, %s3270_s22  ;;  %v177_v37 = vmul.f32 %v175_v34, %v164_v33 }
 0x16f   :  { %v166_v36 = vpop.f32.mrf.mxu0 }
 0x170   :  { %v181_v38 = vmul.f32 %v179_v35, %v166_v36 }
 0x171   :  { %v3528_v63 = vpop.f32.mrf.mxu0 }
 0x172   :  { %v3442_v39 = vadd.f32 %v181_v38, %v177_v37  ;;  %v178_v30 = vmul.f32 %v176_v25, %v3528_v63 }
 0x173   :  { %v172_v1 = vpop.f32.mrf.mxu0 }
 0x174   :  { %209 = vrot.lane.b32.xlu0 %v3442_v39, %s3271_s23  ;;  %v182_v31 = vmul.f32 %v180_v26, %v172_v1 }
 0x176   :  { %v3570_v32 = vadd.f32 %v182_v31, %v178_v30 }
 0x178   :  { %554 = vrot.lane.b32.xlu0 %v3442_v39, %s3272_s24 }
 0x1e0   :  { %v303_v44 = vpop.permute.xlu1 %302 }
 0x1e6   :  { %v210_v43 = vpop.permute.xlu0 %209 }
 0x1e7   :  { %2951 = vmatprep.subr.mxu1 %v210_v43 }
 0x1e8   :  { %2952 = vmatpush3.msra.mxu1 %v210_v43 }
 0x1e9   :  { %2954 = vmatmul.mubr.msk.f32.vlgmr.msra.gmra.mxu1 %vm199_vm3, %v3418_v20  ;;  %2956 = vmatprep.subr.mxu1 %v303_v44 }
 0x1ea   :  { %2957 = vmatpush3.msra.mxu1 %v303_v44  ;;  %2958 = vmatprep.mubr.msk.f32.mxu1 %vm199_vm3, %v3414_v18  ;;  %v555_v62 = vpop.permute.xlu0 %554 }
 0x1eb   :  { %2975 = vmatprep.subr.mxu1 %v3269_v7 }
 0x1ed   :  { %2959 = vmatmul.mubr.msk.f32.vlgmr.msra.gmra.mxu1 %vm199_vm3, %v3418_v20 }
 0x1ee   :  { %2979 = vmatprep.mubr.msk.f32.mxu1 %vm3273_vm4, %v3269_v7 }
 0x2a9   :  { %v2955_v51 = vpop.f32.mrf.mxu1 }
 0x2aa   :  { %v300_v53 = vsel %vm207_vm6, %v2955_v51, %v294_v50 }
 0x2ab   :  { %385 = vst.msk [vmem:[%s3938_s16 + $0x8] sm:$0xff] %vm59_vm0, %v300_v53  ;;  %v284_v54 = vpop.f32.mrf.mxu1  ;;  %2962 = vmatpush3.xpose.msk.msra.mxu0 %vm389_vm5, %v300_v53  ;;  %2976 = vmatpush3.xpose.msk.msra.mxu1 %vm389_vm5, %v300_v53 }
 0x2ac   :  { %v299_v56 = vsel %vm206_vm7, %v284_v54, %v293_v52  ;;  %2963 = vmatprep.subr.mxu0 %v3269_v7  ;;  %2977 = vmatprep.subr.mxu1 %v3269_v7 }
 0x2ad   :  { %384 = vst.msk [vmem:[%s3938_s16] sm:$0xff] %vm59_vm0, %v299_v56  ;;  %v2960_v57 = vpop.f32.mrf.mxu1 }
 0x2ae   :  { %v3497_v59 = vsel %vm207_vm6, %v2960_v57, %v381_v55 }
 0x2af   :  { %387 = vst.msk [vmem:[%s3939_s17 + $0x8] sm:$0xff] %vm59_vm0, %v3497_v59  ;;  %v371_v60 = vpop.f32.mrf.mxu1  ;;  %2964 = vmatpush3.xpose.msk.msra.mxu0 %vm389_vm5, %v299_v56  ;;  %2978 = vmatpush3.xpose.msk.msra.mxu1 %vm389_vm5, %v299_v56 }
 0x2b0   :  { %v3508_v61 = vsel %vm206_vm7, %v371_v60, %v380_v58  ;;  %2968 = vmatprep.subr.mxu0 %v3269_v7  ;;  %2996 = vmatprep.subr.mxu1 %v3269_v7 }
 0x2b1   :  { %386 = vst.msk [vmem:[%s3939_s17] sm:$0xff] %vm59_vm0, %v3508_v61 }
 0x2b2   :  { %2966 = vmatmul.mubr.msk.f32.vlgmr.msra.gmra.mxu0 %vm389_vm5, %v3442_v39  ;;  %2980 = vmatmul.mubr.msk.f32.vlgmr.msra.gmra.mxu1 %vm389_vm5, %v555_v62 }
 0x2b3   :  { %2969 = vmatpush3.msra.mxu0 %v3497_v59  ;;  %2972 = vmatprep.mubr.msk.f32.mxu0 %vm3273_vm4, %v3269_v7 }
 0x2b4   :  { %2970 = vmatprep.subr.mxu0 %v3269_v7  ;;  %3000 = vmatprep.mubr.msk.f32.mxu1 %vm3273_vm4, %v3269_v7 }
 0x2b5   :  { %2971 = vmatpush3.msra.mxu0 %v3508_v61  ;;  %2997 = vmatpush3.msra.mxu1 %v3554_v27 }
 0x2b6   :  { %2982 = vmatprep.subr.mxu0 %v3269_v7  ;;  %2998 = vmatprep.subr.mxu1 %v3269_v7 }
 0x2b7   :  { %2999 = vmatpush3.msra.mxu1 %v3559_v29 }
 0x2b8   :  { %3010 = vmatprep.subr.mxu1 %v3269_v7 }
 0x372   :  { %v464_v2 = vpop.f32.mrf.mxu0  ;;  %v624_v3 = vpop.f32.mrf.mxu1 }
 0x373   :  { %v468_v4 = vmul.f32 0.02, %v464_v2  ;;  %v628_v5 = vmul.f32 0.02, %v624_v3  ;;  %v2817_v3 = vld [vmem:[%s3925_s3 + $0x18] sm:$0xff] }
 0x374   :  { %v2967_v6 = vpop.f32.mrf.mxu0  ;;  %v2981_v8 = vpop.f32.mrf.mxu1 }
 0x375   :  { %3183 = vtanh.f32 %v468_v4 }
 0x376   :  { %3185 = vtanh.f32 %v628_v5  ;;  %v2816_v5 = vld [vmem:[%s3925_s3 + $0x10] sm:$0xff] }
 0x382   :  { %v3184_v9 = vpop.eup %3183 }
 0x383   :  { %v3186_v11 = vpop.eup %3185  ;;  %v470_v12 = vmul.f32 50.0, %v3184_v9 }
 0x384   :  { %v630_v13 = vmul.f32 50.0, %v3186_v11 }
 0x385   :  { %v471_v15 = vadd.f32 %v470_v12, %v3533_v10 }
 0x386   :  { %v631_v16 = vadd.f32 %v630_v13, %v3533_v10 }
 0x387   :  { %v472_v17 = vmul.f32 1.442695, %v471_v15 }
 0x388   :  { %v632_v19 = vmul.f32 1.442695, %v631_v16 }
 0x389   :  { %3187 = vpow2.f32 %v472_v17 }
 0x38a   :  { %3189 = vpow2.f32 %v632_v19 }
 0x396   :  { %v3188_v21 = vpop.eup %3187 }
 0x397   :  { %v3190_v22 = vpop.eup %3189  ;;  %v474_v23 = vsel %vm389_vm5, %v3188_v21, 0.0 }
 0x398   :  { %v634_v24 = vsel %vm389_vm5, %v3190_v22, 0.0  ;;  %475 = vadd.xlane.f32.xlu1 %v474_v23 }
 0x399   :  { %635 = vadd.xlane.f32.xlu0 %v634_v24 }
 0x3a9   :  { %862 = vrot.lane.b32.xlu1 %v299_v56, %s3272_s24 }
 0x3ad   :  { %860 = vrot.lane.b32.xlu1 %v3442_v39, %s3274_s0 }
 0x3af   :  { %864 = vrot.lane.b32.xlu0 %v300_v53, %s3272_s24 }
 0x3b3   :  { %1110 = vrot.lane.b32.xlu0 %v3442_v39, %s3275_s30  ;;  %v3587_v39 = vld [vmem:[%s3931_s9 + $0x18] sm:$0xff] }
 0x3b7   :  { %957 = vrot.lane.b32.xlu0 %v3497_v59, %s3272_s24 }
 0x3bb   :  { %955 = vrot.lane.b32.xlu0 %v3508_v61, %s3272_s24 }
 0x3bf   :  { %1345 = vrot.lane.b32.xlu0 %v3570_v32, %s3271_s23 }
 0x421   :  { %v476_v33 = vpop.xlane.xlu1 %475 }
 0x422   :  { %v636_v34 = vpop.xlane.xlu0 %635  ;;  %3191 = vrcp.f32 %v476_v33  ;;  %v3681_v33 = vld [vmem:[%s3931_s9 + $0x20] sm:$0xff] }
 0x423   :  { %3193 = vrcp.f32 %v636_v34 }
 0x425   :  { %v863_v50 = vpop.permute.xlu1 %862 }
 0x426   :  { %v865_v43 = vpop.permute.xlu0 %864 }
 0x429   :  { %v861_v52 = vpop.permute.xlu1 %860 }
 0x42a   :  { %v1111_v44 = vpop.permute.xlu0 %1110 }
 0x42e   :  { %v3598_v45 = vpop.permute.xlu0 %957 }
 0x42f   :  { %v3192_v35 = vpop.eup %3191 }
 0x430   :  { %v478_v36 = vmul.f32 %v3192_v35, %v3188_v21  ;;  %v3194_v37 = vpop.eup %3193 }
 0x431   :  { %v638_v38 = vmul.f32 %v3194_v37, %v3190_v22  ;;  %v3692_v37 = vld [vmem:[%s3924_s2 + $0x8] sm:$0xff] }
 0x432   :  { %2973 = vmatmul.mubr.msk.f32.vlgmr.msra.gmra.mxu0 %vm389_vm5, %v478_v36  ;;  %v3604_v48 = vpop.permute.xlu0 %955 }
 0x433   :  { %2983 = vmatpush3.msra.mxu0 %v3497_v59  ;;  %2986 = vmatprep.mubr.msk.f32.mxu0 %vm3273_vm4, %v3269_v7 }
 0x434   :  { %2984 = vmatprep.subr.mxu0 %v3269_v7 }
 0x435   :  { %2985 = vmatpush3.msra.mxu0 %v3508_v61 }
 0x436   :  { %2987 = vmatmul.mubr.msk.f32.vlgmr.msra.gmra.mxu0 %vm389_vm5, %v638_v38  ;;  %2989 = vmatprep.subr.mxu0 %v3269_v7  ;;  %v1346_v53 = vpop.permute.xlu0 %1345 }
 0x437   :  { %2993 = vmatprep.mubr.msk.f32.mxu0 %vm3273_vm4, %v3269_v7  ;;  %2990 = vmatpush3.msra.mxu0 %v3587_v39 }
 0x438   :  { %2991 = vmatprep.subr.mxu0 %v3269_v7 }
 0x439   :  { %2992 = vmatpush3.msra.mxu0 %v3594_v40 }
 0x43a   :  { %3003 = vmatprep.subr.mxu0 %v3269_v7 }
 0x4f2   :  { %v548_v46 = vpop.f32.mrf.mxu0 }
 0x4f3   :  { %3001 = vmatmul.mubr.msk.f32.vlgmr.msra.gmra.mxu1 %vm389_vm5, %v548_v46 }
 0x4f4   :  { %3011 = vmatpush3.msra.mxu1 %v3598_v45  ;;  %v2974_v47 = vpop.f32.mrf.mxu0  ;;  %3014 = vmatprep.mubr.msk.f32.mxu1 %vm3273_vm4, %v3269_v7 }
 0x4f5   :  { %3012 = vmatprep.subr.mxu1 %v3269_v7 }
 0x4f6   :  { %3013 = vmatpush3.msra.mxu1 %v3604_v48  ;;  %v708_v49 = vpop.f32.mrf.mxu0 }
 0x4f7   :  { %2994 = vmatmul.mubr.msk.f32.vlgmr.msra.gmra.mxu0 %vm389_vm5, %v708_v49  ;;  %3017 = vmatprep.subr.mxu1 %v3269_v7 }
 0x4f8   :  { %3004 = vmatpush3.xpose.msk.msra.mxu0 %vm389_vm5, %v865_v43  ;;  %v2988_v51 = vpop.f32.mrf.mxu0  ;;  %3007 = vmatprep.mubr.msk.f32.mxu0 %vm3273_vm4, %v3269_v7 }
 0x4f9   :  { %3005 = vmatprep.subr.mxu0 %v3269_v7 }
 0x4fc   :  { %3006 = vmatpush3.xpose.msk.msra.mxu0 %vm389_vm5, %v863_v50 }
 0x4fd   :  { %3024 = vmatprep.subr.mxu0 %v3269_v7 }
 0x4ff   :  { %3008 = vmatmul.mubr.msk.f32.vlgmr.msra.gmra.mxu0 %vm389_vm5, %v861_v52 }
 0x500   :  { %3025 = vmatpush3.xpose.msk.msra.mxu0 %vm389_vm5, %v865_v43  ;;  %3028 = vmatprep.mubr.msk.f32.mxu0 %vm3273_vm4, %v3269_v7 }
 0x501   :  { %3026 = vmatprep.subr.mxu0 %v3269_v7 }
 0x504   :  { %3027 = vmatpush3.xpose.msk.msra.mxu0 %vm389_vm5, %v863_v50 }
 0x505   :  { %3045 = vmatprep.subr.mxu0 %v1346_v53 }
 0x507   :  { %3029 = vmatmul.mubr.msk.f32.vlgmr.msra.gmra.mxu0 %vm389_vm5, %v1111_v44 }
 0x508   :  { %3046 = vmatpush3.msra.mxu0 %v1346_v53  ;;  %3047 = vmatprep.mubr.msk.f32.mxu0 %vm199_vm3, %v3414_v18 }
 0x509   :  { %3055 = vmatprep.subr.mxu0 %v3269_v7 }
 0x50b   :  { %3048 = vmatmul.mubr.msk.f32.vlgmr.msra.gmra.mxu0 %vm199_vm3, %v3418_v20 }
 0x50c   :  { %3059 = vmatprep.mubr.msk.f32.mxu0 %vm3273_vm4, %v3269_v7 }
 0x5b3   :  { %v856_v54 = vpop.f32.mrf.mxu1 }
 0x5b5   :  { %v3002_v55 = vpop.f32.mrf.mxu1 }
 0x5b7   :  { %v783_v56 = vpop.f32.mrf.mxu0 }
 0x5b8   :  { %v3630_v57 = vadd.f32 %v856_v54, %v783_v56  ;;  %v3714_v54 = vld [vmem:[%s3931_s9 + $0x38] sm:$0xff] }
 0x5b9   :  { %v2995_v58 = vpop.f32.mrf.mxu0 }
 0x5bf   :  { %v938_v59 = vpop.f32.mrf.mxu0 }
 0x5c0   :  { %v942_v60 = vmul.f32 0.02, %v938_v59 }
 0x5c1   :  { %v3009_v61 = vpop.f32.mrf.mxu0 }
 0x5c2   :  { %3195 = vtanh.f32 %v942_v60 }
 0x5c7   :  { %v1180_v62 = vpop.f32.mrf.mxu0 }
 0x5c8   :  { %v1184_v1 = vmul.f32 0.02, %v1180_v62 }
 0x5c9   :  { %v3030_v2 = vpop.f32.mrf.mxu0 }
 0x5ca   :  { %3197 = vtanh.f32 %v1184_v1  ;;  %v2821_v1 = vld [vmem:[%s3926_s4 + $0x18] sm:$0xff] }
 0x5cb   :  { %v3049_v4 = vpop.f32.mrf.mxu0 }
 0x5cc   :  { %v3640_v6 = vsel %vm207_vm6, %v3049_v4, %v2817_v3  ;;  %v2820_v3 = vld [vmem:[%s3926_s4 + $0x10] sm:$0xff] }
 0x5cd   :  { %2823 = vst.msk [vmem:[%s3938_s16 + $0x18] sm:$0xff] %vm59_vm0, %v3640_v6  ;;  %v1414_v8 = vpop.f32.mrf.mxu0  ;;  %3056 = vmatpush3.xpose.msk.msra.mxu0 %vm389_vm5, %v3640_v6 }
 0x5ce   :  { %v3651_v9 = vsel %vm206_vm7, %v1414_v8, %v2816_v5  ;;  %3057 = vmatprep.subr.mxu0 %v3269_v7 }
 0x5cf   :  { %v3196_v11 = vpop.eup %3195  ;;  %2822 = vst.msk [vmem:[%s3938_s16 + $0x10] sm:$0xff] %vm59_vm0, %v3651_v9 }
 0x5d0   :  { %v944_v12 = vmul.f32 50.0, %v3196_v11 }
 0x5d1   :  { %3058 = vmatpush3.xpose.msk.msra.mxu0 %vm389_vm5, %v3651_v9 }
 0x5d2   :  { %v945_v13 = vadd.f32 %v944_v12, %v3533_v10  ;;  %3076 = vmatprep.subr.mxu0 %v3269_v7 }
 0x5d4   :  { %v946_v15 = vmul.f32 1.442695, %v945_v13  ;;  %3060 = vmatmul.mubr.msk.f32.vlgmr.msra.gmra.mxu0 %vm389_vm5, %v3570_v32 }
 0x5d5   :  { %3080 = vmatprep.mubr.msk.f32.mxu0 %vm3273_vm4, %v3269_v7 }
 0x5d6   :  { %3199 = vpow2.f32 %v946_v15 }
 0x5d7   :  { %v3198_v16 = vpop.eup %3197 }
 0x5d8   :  { %v1186_v17 = vmul.f32 50.0, %v3198_v16 }
 0x5da   :  { %v1187_v19 = vadd.f32 %v1186_v17, %v3533_v10  ;;  %v3675_v10 = vld [vmem:[%s3931_s9 + $0x28] sm:$0xff] }
 0x5dc   :  { %v1188_v21 = vmul.f32 1.442695, %v1187_v19 }
 0x5de   :  { %3201 = vpow2.f32 %v1188_v21 }
 0x5e3   :  { %v3200_v22 = vpop.eup %3199 }
 0x5e4   :  { %v948_v23 = vsel %vm389_vm5, %v3200_v22, 0.0 }
 0x5e5   :  { %949 = vadd.xlane.f32.xlu1 %v948_v23 }
 0x5eb   :  { %v3202_v24 = vpop.eup %3201 }
 0x5ec   :  { %v1190_v25 = vsel %vm389_vm5, %v3202_v24, 0.0 }
 0x5ed   :  { %1191 = vadd.xlane.f32.xlu0 %v1190_v25 }
 0x5f6   :  { %1429 = vrot.lane.b32.xlu1 %v3528_v63, %s3270_s22 }
 0x66e   :  { %v950_v26 = vpop.xlane.xlu1 %949 }
 0x66f   :  { %3203 = vrcp.f32 %v950_v26 }
 0x676   :  { %v1192_v49 = vpop.xlane.xlu0 %1191 }
 0x67c   :  { %v3204_v30 = vpop.eup %3203 }
 0x67d   :  { %v952_v31 = vmul.f32 %v3204_v30, %v3200_v22 }
 0x67f   :  { %3015 = vmatmul.mubr.msk.f32.vlgmr.msra.gmra.mxu1 %vm389_vm5, %v952_v31 }
 0x680   :  { %3018 = vmatpush3.msra.mxu1 %v3675_v10  ;;  %3021 = vmatprep.mubr.msk.f32.mxu1 %vm3273_vm4, %v3269_v7 }
 0x681   :  { %3019 = vmatprep.subr.mxu1 %v3269_v7 }
 0x682   :  { %3020 = vmatpush3.msra.mxu1 %v3681_v33 }
 0x683   :  { %3031 = vmatprep.subr.mxu1 %v3269_v7 }
 0x694   :  { %v1594_v63 = vpop.f32.mrf.mxu0 }
 0x695   :  { %v1598_v34 = vmul.f32 0.02, %v1594_v63 }
 0x696   :  { %v3061_v35 = vpop.f32.mrf.mxu0 }
 0x697   :  { %3205 = vtanh.f32 %v1598_v34 }
 0x6a4   :  { %v3206_v36 = vpop.eup %3205 }
 0x6a5   :  { %v1600_v38 = vmul.f32 50.0, %v3206_v36 }
 0x6a7   :  { %v1601_v43 = vadd.f32 %v3692_v37, %v1600_v38 }
 0x6a9   :  { %v1602_v44 = vmul.f32 1.442695, %v1601_v43 }
 0x6ab   :  { %3207 = vpow2.f32 %v1602_v44 }
 0x6ac   :  { %3209 = vrcp.f32 %v1192_v49 }
 0x6b8   :  { %v3208_v46 = vpop.eup %3207 }
 0x6b9   :  { %v1604_v47 = vsel %vm389_vm5, %v3208_v46, 0.0  ;;  %v3210_v50 = vpop.eup %3209 }
 0x6ba   :  { %1605 = vadd.xlane.f32.xlu0 %v1604_v47  ;;  %v1194_v53 = vmul.f32 %v3210_v50, %v3202_v24 }
 0x6d0   :  { %1684 = vrot.lane.b32.xlu0 %v3570_v32, %s3272_s24 }
 0x6d4   :  { %1994 = vrot.lane.b32.xlu0 %v3640_v6, %s3272_s24 }
 0x6d8   :  { %1992 = vrot.lane.b32.xlu0 %v3651_v9, %s3272_s24 }
 0x6dc   :  { %1990 = vrot.lane.b32.xlu0 %v3570_v32, %s3274_s0 }
 0x6e0   :  { %2240 = vrot.lane.b32.xlu0 %v3570_v32, %s3275_s30  ;;  %v3722_v32 = vld [vmem:[%s3931_s9 + $0x30] sm:$0xff] }
 0x73f   :  { %v1030_v51 = vpop.f32.mrf.mxu1 }
 0x740   :  { %3022 = vmatmul.mubr.msk.f32.vlgmr.msra.gmra.mxu1 %vm389_vm5, %v1030_v51 }
 0x741   :  { %3032 = vmatpush3.msra.mxu1 %v3598_v45  ;;  %v3016_v52 = vpop.f32.mrf.mxu1  ;;  %3035 = vmatprep.mubr.msk.f32.mxu1 %vm3273_vm4, %v3269_v7  ;;  %v1430_v45 = vpop.permute.xlu1 %1429 }
 0x742   :  { %3033 = vmatprep.subr.mxu1 %v3269_v7 }
 0x743   :  { %3034 = vmatpush3.msra.mxu1 %v3604_v48  ;;  %v1606_v60 = vpop.xlane.xlu0 %1605 }
 0x744   :  { %3038 = vmatprep.subr.mxu1 %v3269_v7  ;;  %3036 = vmatmul.mubr.msk.f32.vlgmr.msra.gmra.mxu1 %vm389_vm5, %v1194_v53  ;;  %3211 = vrcp.f32 %v1606_v60 }
 0x745   :  { %3039 = vmatpush3.msra.mxu1 %v3714_v54  ;;  %3042 = vmatprep.mubr.msk.f32.mxu1 %vm3273_vm4, %v3269_v7 }
 0x746   :  { %3040 = vmatprep.subr.mxu1 %v3269_v7 }
 0x747   :  { %3041 = vmatpush3.msra.mxu1 %v3722_v32  ;;  %v1685_v41 = vpop.permute.xlu0 %1684 }
 0x748   :  { %3050 = vmatprep.subr.mxu1 %v1430_v45 }
 0x74b   :  { %v1995_v30 = vpop.permute.xlu0 %1994 }
 0x74f   :  { %v1993_v63 = vpop.permute.xlu0 %1992 }
 0x751   :  { %v3212_v2 = vpop.eup %3211 }
 0x752   :  { %v1608_v8 = vmul.f32 %v3212_v2, %v3208_v46 }
 0x800   :  { %v1105_v48 = vpop.f32.mrf.mxu1 }
 0x801   :  { %v1109_v55 = vadd.f32 %v1105_v48, %v3630_v57 }
 0x802   :  { %v3023_v56 = vpop.f32.mrf.mxu1 }
 0x804   :  { %v1264_v58 = vpop.f32.mrf.mxu1 }
 0x805   :  { %3043 = vmatmul.mubr.msk.f32.vlgmr.msra.gmra.mxu1 %vm389_vm5, %v1264_v58 }
 0x806   :  { %3051 = vmatpush3.msra.mxu1 %v1430_v45  ;;  %v3037_v59 = vpop.f32.mrf.mxu1  ;;  %3052 = vmatprep.mubr.msk.f32.mxu1 %vm199_vm3, %v3414_v18 }
 0x807   :  { %3062 = vmatprep.subr.mxu1 %v3269_v7 }
 0x809   :  { %3053 = vmatmul.mubr.msk.f32.vlgmr.msra.gmra.mxu1 %vm199_vm3, %v3418_v20 }
 0x80a   :  { %3066 = vmatprep.mubr.msk.f32.mxu1 %vm3273_vm4, %v3269_v7 }
 0x8c5   :  { %v1339_v57 = vpop.f32.mrf.mxu1 }
 0x8c6   :  { %v3738_v61 = vadd.f32 %v1339_v57, %v1109_v55 }
 0x8c7   :  { %v3044_v62 = vpop.f32.mrf.mxu1 }
 0x8c8   :  { %v2475_v60 = vmul.f32 %v3738_v61, %v3738_v61 }
 0x8c9   :  { %v3054_v18 = vpop.f32.mrf.mxu1 }
 0x8ca   :  { %v1511_v20 = vsel %vm207_vm6, %v3054_v18, %v2821_v1  ;;  %v2477_v57 = vsel %vm59_vm0, %v2475_v60, 0.0  ;;  %v2648_v60 = vld [vmem:[%s3935_s13 + $0x38] sm:$0xff] }
 0x8cb   :  { %2825 = vst.msk [vmem:[%s3939_s17 + $0x18] sm:$0xff] %vm59_vm0, %v1511_v20  ;;  %v1498_v4 = vpop.f32.mrf.mxu1  ;;  %3063 = vmatpush3.msra.mxu1 %v1511_v20  ;;  %3077 = vmatpush3.msra.mxu0 %v1511_v20 }
 0x8cc   :  { %v1510_v5 = vsel %vm206_vm7, %v1498_v4, %v2820_v3  ;;  %3064 = vmatprep.subr.mxu1 %v3269_v7  ;;  %3078 = vmatprep.subr.mxu0 %v3269_v7 }
 0x8cd   :  { %2824 = vst.msk [vmem:[%s3939_s17 + $0x10] sm:$0xff] %vm59_vm0, %v1510_v5  ;;  %3065 = vmatpush3.msra.mxu1 %v1510_v5  ;;  %3079 = vmatpush3.msra.mxu0 %v1510_v5 }
 0x8ce   :  { %3067 = vmatmul.mubr.msk.f32.vlgmr.msra.gmra.mxu1 %vm389_vm5, %v1608_v8  ;;  %3069 = vmatprep.subr.mxu1 %v3269_v7 }
 0x8cf   :  { %3070 = vmatpush3.xpose.msk.msra.mxu1 %vm389_vm5, %v3640_v6  ;;  %3073 = vmatprep.mubr.msk.f32.mxu1 %vm3273_vm4, %v3269_v7 }
 0x8d0   :  { %3071 = vmatprep.subr.mxu1 %v3269_v7  ;;  %3083 = vmatprep.subr.mxu0 %v3269_v7 }
 0x8d3   :  { %3072 = vmatpush3.xpose.msk.msra.mxu1 %vm389_vm5, %v3651_v9 }
 0x8d4   :  { %3090 = vmatprep.subr.mxu1 %v3269_v7 }
 0x8d6   :  { %3074 = vmatmul.mubr.msk.f32.vlgmr.msra.gmra.mxu1 %vm389_vm5, %v1685_v41 }
 0x8d7   :  { %3091 = vmatpush3.msra.mxu1 %v3554_v27  ;;  %3094 = vmatprep.mubr.msk.f32.mxu1 %vm3273_vm4, %v3269_v7 }
 0x8d8   :  { %3092 = vmatprep.subr.mxu1 %v3269_v7 }
 0x8d9   :  { %3093 = vmatpush3.msra.mxu1 %v3559_v29 }
 0x8da   :  { %3104 = vmatprep.subr.mxu1 %v3269_v7 }
 0x98e   :  { %v1678_v42 = vpop.f32.mrf.mxu1 }
 0x98f   :  { %3095 = vmatmul.mubr.msk.f32.vlgmr.msra.gmra.mxu1 %vm389_vm5, %v1678_v42 }
 0x990   :  { %v3068_v6 = vpop.f32.mrf.mxu1  ;;  %3108 = vmatprep.mubr.msk.f32.mxu1 %vm3273_vm4, %v3269_v7 }
 0x996   :  { %v1754_v9 = vpop.f32.mrf.mxu1 }
 0x997   :  { %v1758_v11 = vmul.f32 0.02, %v1754_v9 }
 0x998   :  { %v3075_v12 = vpop.f32.mrf.mxu1 }
 0x999   :  { %3213 = vtanh.f32 %v1758_v11 }
 0x9a6   :  { %v3214_v27 = vpop.eup %3213 }
 0x9a7   :  { %v1760_v13 = vmul.f32 50.0, %v3214_v27 }
 0x9a9   :  { %v1761_v15 = vadd.f32 %v3692_v37, %v1760_v13 }
 0x9ab   :  { %v1762_v16 = vmul.f32 1.442695, %v1761_v15 }
 0x9ad   :  { %3215 = vpow2.f32 %v1762_v16 }
 0x9ba   :  { %v3216_v29 = vpop.eup %3215 }
 0x9bb   :  { %v1764_v17 = vsel %vm389_vm5, %v3216_v29, 0.0 }
 0x9bc   :  { %1765 = vadd.xlane.f32.xlu1 %v1764_v17 }
 0x9cd   :  { %2087 = vrot.lane.b32.xlu1 %v1511_v20, %s3272_s24 }
 0x9d1   :  { %2085 = vrot.lane.b32.xlu1 %v1510_v5, %s3272_s24  ;;  %s3276_s24 = smov [#allocation2]  }
 0xa45   :  { %v1766_v19 = vpop.xlane.xlu1 %1765 }
 0xa46   :  { %3217 = vrcp.f32 %v1766_v19 }
 0xa49   :  { %v3785_v21 = vpop.permute.xlu1 %2087 }
 0xa4a   :  { %3105 = vmatpush3.msra.mxu1 %v3785_v21 }
 0xa4b   :  { %3106 = vmatprep.subr.mxu1 %v3269_v7 }
 0xa4d   :  { %v3789_v22 = vpop.permute.xlu1 %2085 }
 0xa4e   :  { %3107 = vmatpush3.msra.mxu1 %v3789_v22 }
 0xa4f   :  { %v3792_v23 = vpop.f32.mrf.mxu1  ;;  %3111 = vmatprep.subr.mxu1 %v3269_v7 }
 0xa51   :  { %v3096_v24 = vpop.f32.mrf.mxu1 }
 0xa53   :  { %v3218_v25 = vpop.eup %3217 }
 0xa54   :  { %v1768_v26 = vmul.f32 %v3218_v25, %v3216_v29 }
 0xa56   :  { %3081 = vmatmul.mubr.msk.f32.vlgmr.msra.gmra.mxu0 %vm389_vm5, %v1768_v26 }
 0xa57   :  { %3084 = vmatpush3.msra.mxu0 %v3587_v39  ;;  %3087 = vmatprep.mubr.msk.f32.mxu0 %vm3273_vm4, %v3269_v7  ;;  %v1991_v39 = vpop.permute.xlu0 %1990 }
 0xa58   :  { %3085 = vmatprep.subr.mxu0 %v3269_v7 }
 0xa59   :  { %3086 = vmatpush3.msra.mxu0 %v3594_v40 }
 0xa5a   :  { %3097 = vmatprep.subr.mxu0 %v3269_v7 }
 0xa5b   :  { %v2241_v40 = vpop.permute.xlu0 %2240 }
 0xb16   :  { %v1838_v31 = vpop.f32.mrf.mxu0 }
 0xb17   :  { %3088 = vmatmul.mubr.msk.f32.vlgmr.msra.gmra.mxu0 %vm389_vm5, %v1838_v31 }
 0xb18   :  { %3098 = vmatpush3.xpose.msk.msra.mxu0 %vm389_vm5, %v1995_v30  ;;  %v3082_v34 = vpop.f32.mrf.mxu0  ;;  %3101 = vmatprep.mubr.msk.f32.mxu0 %vm3273_vm4, %v3269_v7 }
 0xb19   :  { %3099 = vmatprep.subr.mxu0 %v3269_v7 }
 0xb1c   :  { %3100 = vmatpush3.xpose.msk.msra.mxu0 %vm389_vm5, %v1993_v63 }
 0xb1d   :  { %3118 = vmatprep.subr.mxu0 %v3269_v7 }
 0xb1f   :  { %3102 = vmatmul.mubr.msk.f32.vlgmr.msra.gmra.mxu0 %vm389_vm5, %v1991_v39 }
 0xb20   :  { %3119 = vmatpush3.xpose.msk.msra.mxu0 %vm389_vm5, %v1995_v30  ;;  %3122 = vmatprep.mubr.msk.f32.mxu0 %vm3273_vm4, %v3269_v7 }
 0xb21   :  { %3120 = vmatprep.subr.mxu0 %v3269_v7 }
 0xb24   :  { %3121 = vmatpush3.xpose.msk.msra.mxu0 %vm389_vm5, %v1993_v63 }
 0xb27   :  { %3123 = vmatmul.mubr.msk.f32.vlgmr.msra.gmra.mxu0 %vm389_vm5, %v2241_v40 }
 0xbd7   :  { %v1913_v35 = vpop.f32.mrf.mxu0 }
 0xbd9   :  { %v3089_v36 = vpop.f32.mrf.mxu0 }
 0xbdf   :  { %v2068_v38 = vpop.f32.mrf.mxu0 }
 0xbe0   :  { %v2072_v43 = vmul.f32 0.02, %v2068_v38 }
 0xbe1   :  { %v3103_v44 = vpop.f32.mrf.mxu0 }
 0xbe2   :  { %3219 = vtanh.f32 %v2072_v43 }
 0xbe7   :  { %v2310_v46 = vpop.f32.mrf.mxu0 }
 0xbe8   :  { %v2314_v47 = vmul.f32 0.02, %v2310_v46 }
 0xbe9   :  { %v3124_v49 = vpop.f32.mrf.mxu0 }
 0xbea   :  { %3221 = vtanh.f32 %v2314_v47 }
 0xbef   :  { %v3220_v50 = vpop.eup %3219 }
 0xbf0   :  { %v2074_v51 = vmul.f32 50.0, %v3220_v50 }
 0xbf2   :  { %v2075_v52 = vadd.f32 %v3692_v37, %v2074_v51  ;;  %v2531_v51 = vld [vmem:[%s3934_s12 + $0x18] sm:$0xff] }
 0xbf3   :  { %3139 = vmatprep.subr.mxu0 %v2531_v51 }
 0xbf4   :  { %v2076_v53 = vmul.f32 1.442695, %v2075_v52  ;;  %v2530_v52 = vld [vmem:[%s3934_s12 + $0x10] sm:$0xff]  ;;  %3140 = vmatpush3.msra.mxu0 %v2531_v51 }
 0xbf5   :  { %3141 = vmatprep.subr.mxu0 %v2530_v52 }
 0xbf6   :  { %3223 = vpow2.f32 %v2076_v53  ;;  %3142 = vmatpush3.msra.mxu0 %v2530_v52  ;;  %v2528_v53 = vld [vmem:[%s3934_s12] sm:$0xff] }
 0xbf7   :  { %v3222_v45 = vpop.eup %3221 }
 0xbf8   :  { %v2316_v48 = vmul.f32 50.0, %v3222_v45 }
 0xbfa   :  { %v2317_v55 = vadd.f32 %v3692_v37, %v2316_v48 }
 0xbfc   :  { %v2318_v56 = vmul.f32 1.442695, %v2317_v55 }
 0xbfe   :  { %3225 = vpow2.f32 %v2318_v56 }
 0xc03   :  { %v3224_v58 = vpop.eup %3223 }
 0xc04   :  { %v2078_v59 = vsel %vm389_vm5, %v3224_v58, 0.0 }
 0xc05   :  { %2079 = vadd.xlane.f32.xlu0 %v2078_v59 }
 0xc09   :  { %2478 = vadd.xlane.f32.xlu0 %v2477_v57  ;;  %v2647_v57 = vld [vmem:[%s3935_s13 + $0x30] sm:$0xff] }
 0xc0b   :  { %v3226_v62 = vpop.eup %3225 }
 0xc0c   :  { %v2320_v1 = vsel %vm389_vm5, %v3226_v62, 0.0 }
 0xc0d   :  { %2321 = vadd.xlane.f32.xlu1 %v2320_v1  ;;  %v2645_v1 = vld [vmem:[%s3935_s13 + $0x20] sm:$0xff] }
 0xc8e   :  { %v2080_v2 = vpop.xlane.xlu0 %2079 }
 0xc8f   :  { %3227 = vrcp.f32 %v2080_v2  ;;  %v2644_v2 = vld [vmem:[%s3935_s13 + $0x18] sm:$0xff] }
 0xc92   :  { %v2479_v11 = vpop.xlane.xlu0 %2478 }
 0xc93   :  { %v2483_v12 = vmul.f32 0.03125, %v2479_v11 }
 0xc95   :  { %v2485_v27 = vadd.f32 1e-06, %v2483_v12 }
 0xc96   :  { %v2322_v3 = vpop.xlane.xlu1 %2321 }
 0xc97   :  { %3229 = vrcp.f32 %v2322_v3  ;;  %v2641_v3 = vld [vmem:[%s3935_s13] sm:$0xff] }
 0xc98   :  { %3231 = vrsqrt.f32 %v2485_v27 }
 0xc9c   :  { %v3228_v18 = vpop.eup %3227 }
 0xc9d   :  { %v2082_v37 = vmul.f32 %v3228_v18, %v3224_v58  ;;  %v2643_v18 = vld [vmem:[%s3935_s13 + $0x10] sm:$0xff] }
 0xc9f   :  { %3109 = vmatmul.mubr.msk.f32.vlgmr.msra.gmra.mxu1 %vm389_vm5, %v2082_v37  ;;  %v2642_v37 = vld [vmem:[%s3935_s13 + $0x8] sm:$0xff] }
 0xca0   :  { %3112 = vmatpush3.msra.mxu1 %v3675_v10  ;;  %3115 = vmatprep.mubr.msk.f32.mxu1 %vm3273_vm4, %v3269_v7 }
 0xca1   :  { %3113 = vmatprep.subr.mxu1 %v3269_v7 }
 0xca2   :  { %3114 = vmatpush3.msra.mxu1 %v3681_v33  ;;  %v1987_v33 = vadd.f32 %v3792_v23, %v1913_v35 }
 0xca3   :  { %3125 = vmatprep.subr.mxu1 %v3269_v7 }
 0xca4   :  { %v3230_v20 = vpop.eup %3229 }
 0xca5   :  { %v2324_v10 = vmul.f32 %v3230_v20, %v3226_v62  ;;  %v3232_v13 = vpop.eup %3231  ;;  %v2646_v62 = vld [vmem:[%s3935_s13 + $0x28] sm:$0xff] }
 0xd5f   :  { %v2160_v4 = vpop.f32.mrf.mxu1 }
 0xd60   :  { %3116 = vmatmul.mubr.msk.f32.vlgmr.msra.gmra.mxu1 %vm389_vm5, %v2160_v4 }
 0xd61   :  { %3126 = vmatpush3.msra.mxu1 %v3785_v21  ;;  %v3110_v5 = vpop.f32.mrf.mxu1  ;;  %3129 = vmatprep.mubr.msk.f32.mxu1 %vm3273_vm4, %v3269_v7 }
 0xd62   :  { %3127 = vmatprep.subr.mxu1 %v3269_v7 }
 0xd63   :  { %3128 = vmatpush3.msra.mxu1 %v3789_v22 }
 0xd64   :  { %3130 = vmatmul.mubr.msk.f32.vlgmr.msra.gmra.mxu1 %vm389_vm5, %v2324_v10  ;;  %3132 = vmatprep.subr.mxu1 %v3269_v7 }
 0xd65   :  { %3133 = vmatpush3.msra.mxu1 %v3714_v54  ;;  %3136 = vmatprep.mubr.msk.f32.mxu1 %vm3273_vm4, %v3269_v7  ;;  %v2474_v54 = vld [vmem:[%s3932_s10] sm:$0x1]  ;;  %s2766_s10 = sshll.u32 %s3276_s24, 4  ;;  %s2767_s10 = int_to_ptr.vmem [resolvable:$true] %s2766_s10 }
 0xd66   :  { %3134 = vmatprep.subr.mxu1 %v3269_v7  ;;  %v2491_v7 = vadd.f32 1.0, %v2474_v54  ;;  %p3252_p1 = scmp.lt.s32.totalorder %s2767_s10, %s2767_s10 }
 0xd67   :  { %3135 = vmatpush3.msra.mxu1 %v3722_v32  ;;  %v2489_v32 = vmul.f32 %v3232_v13, %v3738_v61 }
 0xd68   :  { %v2496_v15 = vrot.slane %v2491_v7, %v3429_v28  ;;  %3150 = vmatprep.subr.mxu1 %v2648_v60 }
 0xd6a   :  { %v2498_v16 = vmul.f32 %v2496_v15, %v2489_v32 }
 0xd6c   :  { %v3851_v19 = vadd.f32 %v2498_v16, %v3372_v0  ;;  %v2502_v0 = vld [vmem:[%s3933_s11] sm:$0x1] }
 0xd6d   :  { %v2519_v39 = vadd.f32 1.0, %v2502_v0 }
 0xd6e   :  { %v2503_v24 = vmul.f32 %v3851_v19, %v3851_v19 }
 0xd6f   :  { %v2524_v36 = vrot.slane %v2519_v39, %v3429_v28 }
 0xd70   :  { %v2505_v25 = vsel %vm59_vm0, %v2503_v24, 0.0 }
 0xe20   :  { %v2235_v8 = vpop.f32.mrf.mxu1 }
 0xe21   :  { %v2239_v41 = vadd.f32 %v2235_v8, %v1987_v33 }
 0xe22   :  { %v3117_v42 = vpop.f32.mrf.mxu1 }
 0xe24   :  { %v2394_v6 = vpop.f32.mrf.mxu1 }
 0xe25   :  { %3137 = vmatmul.mubr.msk.f32.vlgmr.msra.gmra.mxu1 %vm389_vm5, %v2394_v6 }
 0xe26   :  { %v3131_v9 = vpop.f32.mrf.mxu1  ;;  %3151 = vmatpush3.msra.mxu1 %v2648_v60 }
 0xe27   :  { %3152 = vmatprep.subr.mxu1 %v2647_v57 }
 0xe28   :  { %3153 = vmatpush3.msra.mxu1 %v2647_v57 }
 0xe29   :  { %3154 = vmatprep.subr.mxu1 %v2646_v62 }
 0xe2a   :  { %3155 = vmatpush3.msra.mxu1 %v2646_v62 }
 0xe2b   :  { %3156 = vmatprep.subr.mxu1 %v2645_v1 }
 0xe2c   :  { %3157 = vmatpush3.msra.mxu1 %v2645_v1 }
 0xe2d   :  { %3158 = vmatprep.subr.mxu1 %v2644_v2 }
 0xe2e   :  { %3159 = vmatpush3.msra.mxu1 %v2644_v2 }
 0xe2f   :  { %3160 = vmatprep.subr.mxu1 %v2643_v18 }
 0xe30   :  { %3161 = vmatpush3.msra.mxu1 %v2643_v18 }
 0xe31   :  { %3162 = vmatprep.subr.mxu1 %v2642_v37 }
 0xe32   :  { %3163 = vmatpush3.msra.mxu1 %v2642_v37 }
 0xe33   :  { %3164 = vmatprep.subr.mxu1 %v2641_v3 }
 0xe34   :  { %3165 = vmatpush3.msra.mxu1 %v2641_v3 }
 0xee5   :  { %v2469_v29 = vpop.f32.mrf.mxu1 }
 0xee6   :  { %v2473_v17 = vadd.f32 %v2469_v29, %v2239_v41 }
 0xee7   :  { %v3138_v21 = vpop.f32.mrf.mxu1 }
 0xee8   :  { %v2476_v22 = vmul.f32 %v2473_v17, %v2473_v17 }
 0xeea   :  { %v2480_v23 = vsel %vm59_vm0, %v2476_v22, 0.0 }
 0xeeb   :  { %2481 = vadd.xlane.f32.xlu0 %v2480_v23 }
 0xeef   :  { %2506 = vadd.xlane.f32.xlu0 %v2505_v25 }
 0xf74   :  { %v2482_v61 = vpop.xlane.xlu0 %2481 }
 0xf75   :  { %v2484_v26 = vmul.f32 0.03125, %v2482_v61 }
 0xf77   :  { %v2486_v30 = vadd.f32 1e-06, %v2484_v26 }
 0xf78   :  { %v2507_v31 = vpop.xlane.xlu0 %2506 }
 0xf79   :  { %3233 = vrsqrt.f32 %v2486_v30  ;;  %v2511_v63 = vmul.f32 0.03125, %v2507_v31 }
 0xf7b   :  { %v2513_v34 = vadd.f32 1e-06, %v2511_v63 }
 0xf7d   :  { %3235 = vrsqrt.f32 %v2513_v34 }
 0xf86   :  { %v3234_v40 = vpop.eup %3233 }
 0xf87   :  { %v2490_v35 = vmul.f32 %v3234_v40, %v2473_v17 }
 0xf89   :  { %v2499_v38 = vmul.f32 %v2496_v15, %v2490_v35 }
 0xf8a   :  { %v3236_v43 = vpop.eup %3235 }
 0xf8b   :  { %v2517_v44 = vmul.f32 %v3236_v43, %v3851_v19  ;;  %v3863_v46 = vadd.f32 %v2499_v38, %v3406_v14  ;;  %v2529_v14 = vld [vmem:[%s3934_s12 + $0x8] sm:$0xff] }
 0xf8c   :  { %3143 = vmatprep.subr.mxu0 %v2529_v14 }
 0xf8d   :  { %v2526_v47 = vmul.f32 %v2524_v36, %v2517_v44  ;;  %v2504_v49 = vmul.f32 %v3863_v46, %v3863_v46  ;;  %3144 = vmatpush3.msra.mxu0 %v2529_v14 }
 0xf8e   :  { %3145 = vmatprep.subr.mxu0 %v2528_v53 }
 0xf8f   :  { %3147 = vmatprep.mubr.msk.f32.mxu0 %vm59_vm0, %v2526_v47  ;;  %v2508_v50 = vsel %vm59_vm0, %v2504_v49, 0.0  ;;  %3146 = vmatpush3.msra.mxu0 %v2528_v53 }
 0xf90   :  { %2509 = vadd.xlane.f32.xlu0 %v2508_v50 }
0x1019   :  { %v2510_v45 = vpop.xlane.xlu0 %2509 }
0x101a   :  { %v2512_v48 = vmul.f32 0.03125, %v2510_v45 }
0x101c   :  { %v2514_v55 = vadd.f32 1e-06, %v2512_v48 }
0x101e   :  { %3237 = vrsqrt.f32 %v2514_v55 }
0x102b   :  { %v3238_v56 = vpop.eup %3237 }
0x102c   :  { %v2518_v58 = vmul.f32 %v3238_v56, %v3863_v46 }
0x102e   :  { %v2527_v59 = vmul.f32 %v2524_v36, %v2518_v58  ;;  %v2731_v36 = vld [vmem:[%s3936_s14] sm:$0x1]  ;;  %s3247_s14 = scalar_lea.vmem %s2767_s10, 256 }
0x102f   :  { %v2748_v38 = vadd.f32 1.0, %v2731_v36  ;;  %p3248_p0 = scmp.ne.s32.totalorder %s2767_s10, %s3247_s14  ;;  %p3253_p2 = scmp.lt.s32.totalorder %s3247_s14, %s3247_s14 }
0x1030   :  { %3148 = vmatmul.mubr.msk.f32.vlgmr.msra.gmra.mxu0 %vm59_vm0, %v2527_v59 }
0x1031   :  { %v2753_v43 = vrot.slane %v2748_v38, %v3429_v28  ;;  %p3254_p3 = por %p3253_p2, %p3252_p1 }
0x1033   :  { %p3255_p4 = pnand %p3254_p3, %p3248_p0 }
0x10f0   :  { %v3149_v20 = vpop.f32.mrf.mxu0 }
0x10f1   :  { %2635 = vrot.lane.b32.xlu1 %v3149_v20, %s3271_s23  ;;  %v2616_v10 = vmul.f32 0.044715, %v3149_v20  ;;  %v2614_v15 = vmul.f32 0.5, %v3149_v20 }
0x10f2   :  { %v2604_v4 = vpop.f32.mrf.mxu0 }
0x10f3   :  { %2633 = vrot.lane.b32.xlu0 %v2604_v4, %s3271_s23  ;;  %v2615_v5 = vmul.f32 0.044715, %v2604_v4  ;;  %v2618_v8 = vmul.f32 %v3149_v20, %v2616_v10  ;;  %v2613_v32 = vmul.f32 0.5, %v2604_v4 }
0x10f5   :  { %v2617_v33 = vmul.f32 %v2615_v5, %v2604_v4  ;;  %v2620_v42 = vmul.f32 %v3149_v20, %v2618_v8 }
0x10f7   :  { %v2619_v41 = vmul.f32 %v2617_v33, %v2604_v4  ;;  %v2622_v9 = vadd.f32 %v3149_v20, %v2620_v42 }
0x10f9   :  { %v2621_v6 = vadd.f32 %v2619_v41, %v2604_v4  ;;  %v2624_v12 = vmul.f32 0.7978846, %v2622_v9 }
0x10fb   :  { %v2623_v11 = vmul.f32 0.7978846, %v2621_v6 }
0x10fd   :  { %3239 = vtanh.f32 %v2623_v11 }
0x10fe   :  { %3241 = vtanh.f32 %v2624_v12 }
0x110a   :  { %v3240_v27 = vpop.eup %3239 }
0x110b   :  { %v3242_v54 = vpop.eup %3241  ;;  %v2627_v7 = vadd.f32 1.0, %v3240_v27 }
0x110c   :  { %v2628_v13 = vadd.f32 1.0, %v3242_v54 }
0x110d   :  { %v2629_v29 = vmul.f32 %v2627_v7, %v2613_v32 }
0x110e   :  { %v2630_v17 = vmul.f32 %v2628_v13, %v2614_v15 }
0x1163   :  { %v2636_v16 = vpop.permute.xlu1 %2635 }
0x1164   :  { %v2640_v23 = vmul.f32 %v2636_v16, %v2630_v17 }
0x1165   :  { %v2634_v21 = vpop.permute.xlu0 %2633 }
0x1166   :  { %v2639_v22 = vmul.f32 %v2634_v21, %v2629_v29 }
0x1168   :  { %3166 = vmatprep.mubr.msk.f32.mxu1 %vm2649_vm8, %v2639_v22 }
0x1169   :  { %3167 = vmatmul.mubr.msk.f32.vlgmr.msra.gmra.mxu1 %vm2649_vm8, %v2640_v23 }
0x1229   :  { %v3168_v24 = vpop.f32.mrf.mxu1 }
0x122a   :  { %v2733_v25 = vmul.f32 %v3168_v24, %v3168_v24 }
0x122b   :  { %v2722_v61 = vpop.f32.mrf.mxu1 }
0x122c   :  { %v2732_v26 = vmul.f32 %v2722_v61, %v2722_v61  ;;  %v2737_v30 = vsel %vm59_vm0, %v2733_v25, 0.0 }
0x122d   :  { %2738 = vadd.xlane.f32.xlu1 %v2737_v30 }
0x122e   :  { %v2734_v31 = vsel %vm59_vm0, %v2732_v26, 0.0 }
0x122f   :  { %2735 = vadd.xlane.f32.xlu0 %v2734_v31 }
0x12b6   :  { %v2739_v63 = vpop.xlane.xlu1 %2738 }
0x12b7   :  { %v2741_v34 = vmul.f32 0.03125, %v2739_v63 }
0x12b8   :  { %v2736_v0 = vpop.xlane.xlu0 %2735 }
0x12b9   :  { %v2743_v39 = vadd.f32 1e-06, %v2741_v34  ;;  %v2740_v40 = vmul.f32 0.03125, %v2736_v0 }
0x12bb   :  { %3243 = vrsqrt.f32 %v2743_v39  ;;  %v2742_v35 = vadd.f32 1e-06, %v2740_v40 }
0x12bd   :  { %3245 = vrsqrt.f32 %v2742_v35 }
0x12c8   :  { %v3244_v44 = vpop.eup %3243 }
0x12c9   :  { %v2747_v47 = vmul.f32 %v3244_v44, %v3168_v24 }
0x12ca   :  { %v3246_v49 = vpop.eup %3245 }
0x12cb   :  { %v2746_v50 = vmul.f32 %v3246_v49, %v2722_v61  ;;  %v2756_v51 = vmul.f32 %v2753_v43, %v2747_v47 }
0x12cd   :  { %v2755_v52 = vmul.f32 %v2753_v43, %v2746_v50  ;;  %v2758_v14 = vadd.f32 %v2756_v51, %v3863_v46 }
0x12cf   :  { %v2757_v53 = vadd.f32 %v2755_v52, %v3851_v19  ;;  %2760 = vst.msk [vmem:[#allocation2 + $0x8] sm:$0xff] %vm59_vm0, %v2758_v14 }
0x12d1   :  { %2759 = vst.msk [vmem:[#allocation2] sm:$0xff] %vm59_vm0, %v2757_v53 }
0x12d2   :  { %3258 = shalt.err (!%p3255_p4)
}
0x12d3   :  { %s3277_s8 = smov 128   ;;  %s3278_s11 = smov 8  }
0x12d4   :  { %2772 = dma.vmem_to_hbm [thread:$0]  %s2767_s10, 256, %s3937_s15, [#allocation3], %s3277_s8, %s3277_s8, %s3278_s11  }
0x12d5   :  { %3267 = dma.done.wait [#allocation3], 256  }
0x12d6   :  { %3268 = vsyncadd [#allocation3], 4294967040 }
0x12d7   :  { %2784 = vsyncpa [#allocation3], 1 }

</bundles_post_ra>
